<compile_context>
chip_gen: v5e
topology: v5e:2x2
jax: 0.10.0
libtpu: 0.0.40
codegen_flags: <defaults>
</compile_context>

<pallas_src>
import functools

import jax
import jax.numpy as jnp
from jax import lax
from jax.experimental import pallas as pl
from jax.experimental.pallas import tpu as pltpu


def _round_up(x, m):
    return (x + m - 1) // m * m


def _pick_vmem_limit():
    """Scoped-VMEM limit; only matters once D-tiling / big blocks are added."""
    try:
        cap = int(pltpu.get_tpu_info().vmem_capacity_bytes)
        return min(cap * 3 // 4, 96 * 1024 * 1024)
    except Exception:  # defensive: interpret mode / missing attribute
        return None


def _fused_convblock_kernel(x_ref, mask_ref, *refs, n_stages, k_rows, lpad,
                            m_rows, hp, pad_front, compute_dtype):
    """Fused n_stages x (3x3x3 conv + bias + ReLU) for one batch element.

    x_ref:    (1, R, Wp*Cin0)  pre-padded volume, rows = padded (d, h),
                               lanes = padded w x channels (compute dtype)
    mask_ref: (M, 1) f32       1.0 on rows whose inflated h-coordinate < H
    refs:     w_0..w_{S-1} (9*K_s, Lpad) banded weights (compute dtype),
              b_0..b_{S-1} (1, Lpad) f32 bias (zero on halo lanes),
              o_ref (1, M, Lpad) f32, act scratch (R, Lpad) compute dtype
    """
    w_refs = refs[:n_stages]
    b_refs = refs[n_stages:2 * n_stages]
    o_ref = refs[2 * n_stages]
    act_ref = refs[2 * n_stages + 1]

    mask = mask_ref[...]                               # (M, 1) f32

    if n_stages > 1:
        # Zero ONCE per batch element: halo / tail rows are never written by
        # the stage loop; interior rows are fully overwritten every stage.
        act_ref[...] = jnp.zeros_like(act_ref)

    write_start = pad_front + hp + 1                   # padded (d=1, h=1) row

    for s in range(n_stages):
        kr = k_rows[s]
        acc = jnp.zeros((m_rows, lpad), jnp.float32)
        for kd in range(3):
            for kh in range(3):
                t = kd * 3 + kh
                off = pad_front + kd * hp + kh         # constant row shift
                if s == 0:
                    a = x_ref[0, off:off + m_rows, :]
                else:
                    a = act_ref[off:off + m_rows, :]
                acc += jnp.dot(a.astype(compute_dtype),
                               w_refs[s][t * kr:(t + 1) * kr, :],
                               preferred_element_type=jnp.float32)

        # Bias + ReLU in f32; halo lanes have zero weight columns and zero
        # bias, so they stay exactly zero.
        acc = jnp.maximum(acc + b_refs[s][...], 0.0)

        if s + 1 < n_stages:
            # Valid rows land at padded (d+1, h+1) of the next stage's input;
            # inflated (h >= H) rows are masked to zero so they act as the
            # h/d zero padding for the next stage.
            act_ref[write_start:write_start + m_rows, :] = (
                (acc * mask).astype(act_ref.dtype))
        else:
            # Lane-dense f32 store; the wrapper strips halo lanes / rows.
            o_ref[0] = acc.astype(o_ref.dtype)


def conv_block_forward(x, params, *, compute_dtype=jnp.bfloat16):
    """Fused ConvBlock forward: n_stages x (Conv3d(3, pad=1) + ReLU).

    x: (N, D, H, W, Cin) channels-last float32.
    params: list of (w, b), w: (3, 3, 3, Cin_s, Cout), b: (Cout,).
    """
    N, D, H, W, c0 = x.shape
    n_stages = len(params)
    cout = params[0][0].shape[-1]
    for i, (w, _) in enumerate(params):
        assert w.shape == (3, 3, 3, (c0 if i == 0 else cout), cout), w.shape

    dp, hp, wp = D + 2, H + 2, W + 2
    m_rows = D * hp                        # h-inflated output rows per element
    lin0 = wp * c0                         # stage-0 lane width
    lout = wp * cout                       # padded-w output lane width
    lpad = _round_up(lout, 128)            # lane-dense accumulator / output
    pad_front = (-(hp + 1)) % 8            # makes the scratch write 8-aligned
    r_rows = _round_up(pad_front + dp * hp + 2, 8)

    # Pad the spatial halo ONCE, flatten to (rows = padded (d,h), lanes = w*c),
    # and add the front/tail row padding the tap shifts need.
    xq = jnp.pad(x, ((0, 0), (1, 1), (1, 1), (1, 1), (0, 0)))
    xq = xq.reshape(N, dp * hp, lin0)
    xq = jnp.pad(xq, ((0, 0), (pad_front, r_rows - pad_front - dp * hp), (0, 0)))
    xq = xq.astype(compute_dtype)

    # Banded weights: fold the (kw, ci) reduction into a dense (K, Lpad) matrix
    # per (kd, kh) tap; output lanes sit at padded position (w+1)*Cout + co so
    # the stage output is already in the next stage's lane layout.
    wsel = jnp.arange(W)
    wpsel = jnp.arange(wp)
    A = ((wsel[:, None, None] + jnp.arange(3)[None, :, None])
         == wpsel[None, None, :]).astype(jnp.float32)            # (W, 3, Wp)
    B = ((wsel[:, None] + 1) == wpsel[None, :]).astype(jnp.float32)  # (W, Wp)

    w_list, b_list, k_rows = [], [], []
    for i, (w, b) in enumerate(params):
        cin = w.shape[3]
        band = jnp.einsum('wkp,wq,dhkio->dhpiqo', A, B, w.astype(jnp.float32))
        band = band.reshape(9, wp * cin, wp * cout)
        kr = wp * cin if i == 0 else lpad           # stages >=1 read full lanes
        band = jnp.pad(band, ((0, 0), (0, kr - wp * cin), (0, lpad - wp * cout)))
        w_list.append(band.reshape(9 * kr, lpad).astype(compute_dtype))

        bias = jnp.zeros((lpad,), jnp.float32)
        bias = bias.at[cout:(W + 1) * cout].set(jnp.tile(b, W))   # halo lanes 0
        b_list.append(bias.reshape(1, lpad))
        k_rows.append(kr)

    # Row-validity mask over inflated rows q = d*Hp + h (valid iff h < H).
    q = jnp.arange(m_rows, dtype=jnp.int32)
    mask = ((q % hp) < H).astype(jnp.float32).reshape(m_rows, 1)

    kernel = functools.partial(
        _fused_convblock_kernel, n_stages=n_stages, k_rows=tuple(k_rows),
        lpad=lpad, m_rows=m_rows, hp=hp, pad_front=pad_front,
        compute_dtype=compute_dtype)

    in_specs = [
        pl.BlockSpec((1, r_rows, lin0), lambda n: (n, 0, 0)),
        pl.BlockSpec((m_rows, 1), lambda n: (0, 0)),
    ]
    in_specs += [pl.BlockSpec((9 * k_rows[s], lpad), lambda n: (0, 0))
                 for s in range(n_stages)]
    in_specs += [pl.BlockSpec((1, lpad), lambda n: (0, 0))
                 for _ in range(n_stages)]

    itemsize = jnp.dtype(compute_dtype).itemsize
    flops = 2 * N * sum(9 * m_rows * kr * lpad for kr in k_rows)
    bytes_accessed = (N * r_rows * lin0 * itemsize
                      + sum(9 * kr * lpad * itemsize for kr in k_rows)
                      + n_stages * lpad * 4 + m_rows * 4
                      + N * m_rows * lpad * 4)

    cp_kwargs = dict(dimension_semantics=("parallel",))
    vmem_limit = _pick_vmem_limit()
    if vmem_limit is not None:
        cp_kwargs["vmem_limit_bytes"] = vmem_limit

    out = pl.pallas_call(
        kernel,
        out_shape=jax.ShapeDtypeStruct((N, m_rows, lpad), jnp.float32),
        grid_spec=pltpu.PrefetchScalarGridSpec(
            num_scalar_prefetch=0,
            grid=(N,),
            in_specs=in_specs,
            out_specs=pl.BlockSpec((1, m_rows, lpad), lambda n: (n, 0, 0)),
            scratch_shapes=[pltpu.VMEM((r_rows, lpad), compute_dtype)],
        ),
        compiler_params=pltpu.CompilerParams(**cp_kwargs),
        cost_estimate=pl.CostEstimate(flops=flops, transcendentals=0,
                                      bytes_accessed=bytes_accessed),
    )(xq, mask, *w_list, *b_list)

    # Strip halo lanes (w_out = 0 / Wp-1 and the 128-pad tail) and the
    # h-inflated rows with one cheap XLA slice.
    out = out[:, :, cout:(W + 1) * cout]
    out = out.reshape(N, D, hp, W, cout)[:, :, :H, :, :]
    return out


def init_conv_block_params(key, n_stages, n_filters_in, n_filters_out):
    """Deterministic parameter init (shapes match nn.Conv3d(k=3, pad=1))."""
    params = []
    for i in range(n_stages):
        cin = n_filters_in if i == 0 else n_filters_out
        key, kw, kb = jax.random.split(key, 3)
        fan_in = cin * 27
        bound = 1.0 / jnp.sqrt(fan_in)
        w = jax.random.uniform(kw, (3, 3, 3, cin, n_filters_out),
                               minval=-bound, maxval=bound, dtype=jnp.float32)
        b = jax.random.uniform(kb, (n_filters_out,),
                               minval=-bound, maxval=bound, dtype=jnp.float32)
        params.append((w, b))
    return params


def _reference_forward(x, params):
    """Pure-JAX reference (lax.conv) for correctness check."""
    dn = lax.conv_dimension_numbers(
        x.shape, params[0][0].shape, ('NDHWC', 'DHWIO', 'NDHWC'))
    for (w, b) in params:
        x = lax.conv_general_dilated(
            x, w, window_strides=(1, 1, 1), padding='SAME',
            dimension_numbers=dn)
        x = jnp.maximum(x + b, 0.0)
    return x


if __name__ == "__main__":
    key = jax.random.PRNGKey(0)
    key, kx = jax.random.split(key)

    # ConvBlock(n_stages=2, n_filters_in=4, n_filters_out=8), 8^3 volume, N=2.
    N, D, H, W = 2, 8, 8, 8
    n_stages, n_filters_in, n_filters_out = 2, 4, 8

    # PyTorch input would be NCDHW = (2, 4, 8, 8, 8); we use NDHWC.
    x = jax.random.normal(kx, (N, D, H, W, n_filters_in), dtype=jnp.float32)
    params = init_conv_block_params(key, n_stages, n_filters_in, n_filters_out)

    ref = _reference_forward(x, params)

    # Strict numerics check with f32 MXU operands.
    fwd_f32 = jax.jit(functools.partial(conv_block_forward,
                                        compute_dtype=jnp.float32))
    out_f32 = jax.block_until_ready(fwd_f32(x, params))
    assert out_f32.shape == (N, D, H, W, n_filters_out), out_f32.shape
    err_f32 = float(jnp.max(jnp.abs(out_f32 - ref)))
    assert jnp.allclose(out_f32, ref, atol=1e-4, rtol=1e-4), err_f32

    # Default path: bf16 MXU operands / bf16 scratch, f32 accumulate (loose check).
    fwd_bf16 = jax.jit(conv_block_forward)
    out_bf16 = jax.block_until_ready(fwd_bf16(x, params))
    err_bf16 = float(jnp.max(jnp.abs(out_bf16 - ref)))
    assert err_bf16 < 0.15, err_bf16

    print("KERNEL_OK")
</pallas_src>

<mosaic_0001>
module attributes {stable_mosaic.version = 11 : i64} {
  func.func @_fused_convblock_kernel(%arg0: i32, %arg1: memref<1x112x40xf32, #tpu.memory_space<vmem>>, %arg2: memref<80x1xf32, #tpu.memory_space<vmem>>, %arg3: memref<360x128xf32, #tpu.memory_space<vmem>>, %arg4: memref<1152x128xf32, #tpu.memory_space<vmem>>, %arg5: memref<1x128xf32, #tpu.memory_space<vmem>>, %arg6: memref<1x128xf32, #tpu.memory_space<vmem>>, %arg7: memref<1x80x128xf32, #tpu.memory_space<vmem>>, %arg8: memref<112x128xf32, #tpu.memory_space<vmem>>) attributes {dimension_semantics = [#tpu.dimension_semantics<parallel>], iteration_bounds = array<i64: 2>, scalar_prefetch = 0 : i64, scratch_operands = 1 : i64, tpu.core_type = #tpu.core_type<tc>, window_params = [{transform_indices = @transform_0, window_bounds = array<i64: 1, 112, 40>}, {pipeline_mode = #tpu.pipeline_mode<synchronous>, transform_indices = @transform_1, window_bounds = array<i64: 80, 1>}, {pipeline_mode = #tpu.pipeline_mode<synchronous>, transform_indices = @transform_2, window_bounds = array<i64: 360, 128>}, {pipeline_mode = #tpu.pipeline_mode<synchronous>, transform_indices = @transform_3, window_bounds = array<i64: 1152, 128>}, {pipeline_mode = #tpu.pipeline_mode<synchronous>, transform_indices = @transform_4, window_bounds = array<i64: 1, 128>}, {pipeline_mode = #tpu.pipeline_mode<synchronous>, transform_indices = @transform_5, window_bounds = array<i64: 1, 128>}, {transform_indices = @transform_6, window_bounds = array<i64: 1, 80, 128>}]} {
    %c0 = arith.constant 0 : index
    %c0_0 = arith.constant 0 : index
    %0 = vector.load %arg2[%c0, %c0_0] : memref<80x1xf32, #tpu.memory_space<vmem>>, vector<80x1xf32>
    %cst = arith.constant 0.000000e+00 : f32
    %1 = vector.broadcast %cst : f32 to vector<112x128xf32>
    %c0_1 = arith.constant 0 : index
    %c0_2 = arith.constant 0 : index
    %2 = vector.load %arg8[%c0_1, %c0_2] : memref<112x128xf32, #tpu.memory_space<vmem>>, vector<112x128xf32>
    tpu.vector_store %arg8[%c0_1, %c0_2], %1 {strides = array<i32>} : memref<112x128xf32, #tpu.memory_space<vmem>>, vector<112x128xf32>,
    %cst_3 = arith.constant 0.000000e+00 : f32
    %3 = vector.broadcast %cst_3 : f32 to vector<80x128xf32>
    %c0_4 = arith.constant 0 : index
    %c5 = arith.constant 5 : index
    %c0_5 = arith.constant 0 : index
    %4 = vector.load %arg1[%c0_4, %c5, %c0_5] : memref<1x112x40xf32, #tpu.memory_space<vmem>>, vector<1x80x40xf32>
    %5 = vector.shape_cast %4 : vector<1x80x40xf32> to vector<80x40xf32>
    %c0_6 = arith.constant 0 : index
    %c0_7 = arith.constant 0 : index
    %6 = vector.load %arg3[%c0_6, %c0_7] : memref<360x128xf32, #tpu.memory_space<vmem>>, vector<40x128xf32>
    %cst_8 = arith.constant dense<0.000000e+00> : vector<80x128xf32>
    %7 = tpu.matmul %5, %6, %cst_8 {dimension_numbers = #tpu.dot_dimension_numbers<[1], [0], [0], [1], [0, 0, 1, 1], [], []>} : vector<80x40xf32>, vector<40x128xf32>, vector<80x128xf32> -> vector<80x128xf32>
    %8 = arith.addf %3, %7 : vector<80x128xf32>
    %c0_9 = arith.constant 0 : index
    %c6 = arith.constant 6 : index
    %c0_10 = arith.constant 0 : index
    %9 = vector.load %arg1[%c0_9, %c6, %c0_10] : memref<1x112x40xf32, #tpu.memory_space<vmem>>, vector<1x80x40xf32>
    %10 = vector.shape_cast %9 : vector<1x80x40xf32> to vector<80x40xf32>
    %c40 = arith.constant 40 : index
    %c0_11 = arith.constant 0 : index
    %11 = vector.load %arg3[%c40, %c0_11] : memref<360x128xf32, #tpu.memory_space<vmem>>, vector<40x128xf32>
    %cst_12 = arith.constant dense<0.000000e+00> : vector<80x128xf32>
    %12 = tpu.matmul %10, %11, %cst_12 {dimension_numbers = #tpu.dot_dimension_numbers<[1], [0], [0], [1], [0, 0, 1, 1], [], []>} : vector<80x40xf32>, vector<40x128xf32>, vector<80x128xf32> -> vector<80x128xf32>
    %13 = arith.addf %8, %12 : vector<80x128xf32>
    %c0_13 = arith.constant 0 : index
    %c7 = arith.constant 7 : index
    %c0_14 = arith.constant 0 : index
    %14 = vector.load %arg1[%c0_13, %c7, %c0_14] : memref<1x112x40xf32, #tpu.memory_space<vmem>>, vector<1x80x40xf32>
    %15 = vector.shape_cast %14 : vector<1x80x40xf32> to vector<80x40xf32>
    %c80 = arith.constant 80 : index
    %c0_15 = arith.constant 0 : index
    %16 = vector.load %arg3[%c80, %c0_15] : memref<360x128xf32, #tpu.memory_space<vmem>>, vector<40x128xf32>
    %cst_16 = arith.constant dense<0.000000e+00> : vector<80x128xf32>
    %17 = tpu.matmul %15, %16, %cst_16 {dimension_numbers = #tpu.dot_dimension_numbers<[1], [0], [0], [1], [0, 0, 1, 1], [], []>} : vector<80x40xf32>, vector<40x128xf32>, vector<80x128xf32> -> vector<80x128xf32>
    %18 = arith.addf %13, %17 : vector<80x128xf32>
    %c0_17 = arith.constant 0 : index
    %c15 = arith.constant 15 : index
    %c0_18 = arith.constant 0 : index
    %19 = vector.load %arg1[%c0_17, %c15, %c0_18] : memref<1x112x40xf32, #tpu.memory_space<vmem>>, vector<1x80x40xf32>
    %20 = vector.shape_cast %19 : vector<1x80x40xf32> to vector<80x40xf32>
    %c120 = arith.constant 120 : index
    %c0_19 = arith.constant 0 : index
    %21 = vector.load %arg3[%c120, %c0_19] : memref<360x128xf32, #tpu.memory_space<vmem>>, vector<40x128xf32>
    %cst_20 = arith.constant dense<0.000000e+00> : vector<80x128xf32>
    %22 = tpu.matmul %20, %21, %cst_20 {dimension_numbers = #tpu.dot_dimension_numbers<[1], [0], [0], [1], [0, 0, 1, 1], [], []>} : vector<80x40xf32>, vector<40x128xf32>, vector<80x128xf32> -> vector<80x128xf32>
    %23 = arith.addf %18, %22 : vector<80x128xf32>
    %c0_21 = arith.constant 0 : index
    %c16 = arith.constant 16 : index
    %c0_22 = arith.constant 0 : index
    %24 = vector.load %arg1[%c0_21, %c16, %c0_22] : memref<1x112x40xf32, #tpu.memory_space<vmem>>, vector<1x80x40xf32>
    %25 = vector.shape_cast %24 : vector<1x80x40xf32> to vector<80x40xf32>
    %c160 = arith.constant 160 : index
    %c0_23 = arith.constant 0 : index
    %26 = vector.load %arg3[%c160, %c0_23] : memref<360x128xf32, #tpu.memory_space<vmem>>, vector<40x128xf32>
    %cst_24 = arith.constant dense<0.000000e+00> : vector<80x128xf32>
    %27 = tpu.matmul %25, %26, %cst_24 {dimension_numbers = #tpu.dot_dimension_numbers<[1], [0], [0], [1], [0, 0, 1, 1], [], []>} : vector<80x40xf32>, vector<40x128xf32>, vector<80x128xf32> -> vector<80x128xf32>
    %28 = arith.addf %23, %27 : vector<80x128xf32>
    %c0_25 = arith.constant 0 : index
    %c17 = arith.constant 17 : index
    %c0_26 = arith.constant 0 : index
    %29 = vector.load %arg1[%c0_25, %c17, %c0_26] : memref<1x112x40xf32, #tpu.memory_space<vmem>>, vector<1x80x40xf32>
    %30 = vector.shape_cast %29 : vector<1x80x40xf32> to vector<80x40xf32>
    %c200 = arith.constant 200 : index
    %c0_27 = arith.constant 0 : index
    %31 = vector.load %arg3[%c200, %c0_27] : memref<360x128xf32, #tpu.memory_space<vmem>>, vector<40x128xf32>
    %cst_28 = arith.constant dense<0.000000e+00> : vector<80x128xf32>
    %32 = tpu.matmul %30, %31, %cst_28 {dimension_numbers = #tpu.dot_dimension_numbers<[1], [0], [0], [1], [0, 0, 1, 1], [], []>} : vector<80x40xf32>, vector<40x128xf32>, vector<80x128xf32> -> vector<80x128xf32>
    %33 = arith.addf %28, %32 : vector<80x128xf32>
    %c0_29 = arith.constant 0 : index
    %c25 = arith.constant 25 : index
    %c0_30 = arith.constant 0 : index
    %34 = vector.load %arg1[%c0_29, %c25, %c0_30] : memref<1x112x40xf32, #tpu.memory_space<vmem>>, vector<1x80x40xf32>
    %35 = vector.shape_cast %34 : vector<1x80x40xf32> to vector<80x40xf32>
    %c240 = arith.constant 240 : index
    %c0_31 = arith.constant 0 : index
    %36 = vector.load %arg3[%c240, %c0_31] : memref<360x128xf32, #tpu.memory_space<vmem>>, vector<40x128xf32>
    %cst_32 = arith.constant dense<0.000000e+00> : vector<80x128xf32>
    %37 = tpu.matmul %35, %36, %cst_32 {dimension_numbers = #tpu.dot_dimension_numbers<[1], [0], [0], [1], [0, 0, 1, 1], [], []>} : vector<80x40xf32>, vector<40x128xf32>, vector<80x128xf32> -> vector<80x128xf32>
    %38 = arith.addf %33, %37 : vector<80x128xf32>
    %c0_33 = arith.constant 0 : index
    %c26 = arith.constant 26 : index
    %c0_34 = arith.constant 0 : index
    %39 = vector.load %arg1[%c0_33, %c26, %c0_34] : memref<1x112x40xf32, #tpu.memory_space<vmem>>, vector<1x80x40xf32>
    %40 = vector.shape_cast %39 : vector<1x80x40xf32> to vector<80x40xf32>
    %c280 = arith.constant 280 : index
    %c0_35 = arith.constant 0 : index
    %41 = vector.load %arg3[%c280, %c0_35] : memref<360x128xf32, #tpu.memory_space<vmem>>, vector<40x128xf32>
    %cst_36 = arith.constant dense<0.000000e+00> : vector<80x128xf32>
    %42 = tpu.matmul %40, %41, %cst_36 {dimension_numbers = #tpu.dot_dimension_numbers<[1], [0], [0], [1], [0, 0, 1, 1], [], []>} : vector<80x40xf32>, vector<40x128xf32>, vector<80x128xf32> -> vector<80x128xf32>
    %43 = arith.addf %38, %42 : vector<80x128xf32>
    %c0_37 = arith.constant 0 : index
    %c27 = arith.constant 27 : index
    %c0_38 = arith.constant 0 : index
    %44 = vector.load %arg1[%c0_37, %c27, %c0_38] : memref<1x112x40xf32, #tpu.memory_space<vmem>>, vector<1x80x40xf32>
    %45 = vector.shape_cast %44 : vector<1x80x40xf32> to vector<80x40xf32>
    %c320 = arith.constant 320 : index
    %c0_39 = arith.constant 0 : index
    %46 = vector.load %arg3[%c320, %c0_39] : memref<360x128xf32, #tpu.memory_space<vmem>>, vector<40x128xf32>
    %cst_40 = arith.constant dense<0.000000e+00> : vector<80x128xf32>
    %47 = tpu.matmul %45, %46, %cst_40 {dimension_numbers = #tpu.dot_dimension_numbers<[1], [0], [0], [1], [0, 0, 1, 1], [], []>} : vector<80x40xf32>, vector<40x128xf32>, vector<80x128xf32> -> vector<80x128xf32>
    %48 = arith.addf %43, %47 : vector<80x128xf32>
    %c0_41 = arith.constant 0 : index
    %c0_42 = arith.constant 0 : index
    %49 = vector.load %arg5[%c0_41, %c0_42] : memref<1x128xf32, #tpu.memory_space<vmem>>, vector<1x128xf32>
    %50 = vector.broadcast %49 : vector<1x128xf32> to vector<80x128xf32>
    %51 = arith.addf %48, %50 : vector<80x128xf32>
    %cst_43 = arith.constant 0.000000e+00 : f32
    %52 = vector.broadcast %cst_43 : f32 to vector<80x128xf32>
    %53 = arith.maximumf %51, %52 : vector<80x128xf32>
    %54 = vector.broadcast %0 : vector<80x1xf32> to vector<80x128xf32>
    %55 = arith.mulf %53, %54 : vector<80x128xf32>
    %c16_44 = arith.constant 16 : index
    %c0_45 = arith.constant 0 : index
    %56 = vector.load %arg8[%c16_44, %c0_45] : memref<112x128xf32, #tpu.memory_space<vmem>>, vector<80x128xf32>
    tpu.vector_store %arg8[%c16_44, %c0_45], %55 {strides = array<i32>} : memref<112x128xf32, #tpu.memory_space<vmem>>, vector<80x128xf32>,
    %cst_46 = arith.constant 0.000000e+00 : f32
    %57 = vector.broadcast %cst_46 : f32 to vector<80x128xf32>
    %c5_47 = arith.constant 5 : index
    %c0_48 = arith.constant 0 : index
    %58 = vector.load %arg8[%c5_47, %c0_48] : memref<112x128xf32, #tpu.memory_space<vmem>>, vector<80x128xf32>
    %c0_49 = arith.constant 0 : index
    %c0_50 = arith.constant 0 : index
    %59 = vector.load %arg4[%c0_49, %c0_50] : memref<1152x128xf32, #tpu.memory_space<vmem>>, vector<128x128xf32>
    %cst_51 = arith.constant dense<0.000000e+00> : vector<80x128xf32>
    %60 = tpu.matmul %58, %59, %cst_51 {dimension_numbers = #tpu.dot_dimension_numbers<[1], [0], [0], [1], [0, 0, 1, 1], [], []>} : vector<80x128xf32>, vector<128x128xf32>, vector<80x128xf32> -> vector<80x128xf32>
    %61 = arith.addf %57, %60 : vector<80x128xf32>
    %c6_52 = arith.constant 6 : index
    %c0_53 = arith.constant 0 : index
    %62 = vector.load %arg8[%c6_52, %c0_53] : memref<112x128xf32, #tpu.memory_space<vmem>>, vector<80x128xf32>
    %c128 = arith.constant 128 : index
    %c0_54 = arith.constant 0 : index
    %63 = vector.load %arg4[%c128, %c0_54] : memref<1152x128xf32, #tpu.memory_space<vmem>>, vector<128x128xf32>
    %cst_55 = arith.constant dense<0.000000e+00> : vector<80x128xf32>
    %64 = tpu.matmul %62, %63, %cst_55 {dimension_numbers = #tpu.dot_dimension_numbers<[1], [0], [0], [1], [0, 0, 1, 1], [], []>} : vector<80x128xf32>, vector<128x128xf32>, vector<80x128xf32> -> vector<80x128xf32>
    %65 = arith.addf %61, %64 : vector<80x128xf32>
    %c7_56 = arith.constant 7 : index
    %c0_57 = arith.constant 0 : index
    %66 = vector.load %arg8[%c7_56, %c0_57] : memref<112x128xf32, #tpu.memory_space<vmem>>, vector<80x128xf32>
    %c256 = arith.constant 256 : index
    %c0_58 = arith.constant 0 : index
    %67 = vector.load %arg4[%c256, %c0_58] : memref<1152x128xf32, #tpu.memory_space<vmem>>, vector<128x128xf32>
    %cst_59 = arith.constant dense<0.000000e+00> : vector<80x128xf32>
    %68 = tpu.matmul %66, %67, %cst_59 {dimension_numbers = #tpu.dot_dimension_numbers<[1], [0], [0], [1], [0, 0, 1, 1], [], []>} : vector<80x128xf32>, vector<128x128xf32>, vector<80x128xf32> -> vector<80x128xf32>
    %69 = arith.addf %65, %68 : vector<80x128xf32>
    %c15_60 = arith.constant 15 : index
    %c0_61 = arith.constant 0 : index
    %70 = vector.load %arg8[%c15_60, %c0_61] : memref<112x128xf32, #tpu.memory_space<vmem>>, vector<80x128xf32>
    %c384 = arith.constant 384 : index
    %c0_62 = arith.constant 0 : index
    %71 = vector.load %arg4[%c384, %c0_62] : memref<1152x128xf32, #tpu.memory_space<vmem>>, vector<128x128xf32>
    %cst_63 = arith.constant dense<0.000000e+00> : vector<80x128xf32>
    %72 = tpu.matmul %70, %71, %cst_63 {dimension_numbers = #tpu.dot_dimension_numbers<[1], [0], [0], [1], [0, 0, 1, 1], [], []>} : vector<80x128xf32>, vector<128x128xf32>, vector<80x128xf32> -> vector<80x128xf32>
    %73 = arith.addf %69, %72 : vector<80x128xf32>
    %c16_64 = arith.constant 16 : index
    %c0_65 = arith.constant 0 : index
    %74 = vector.load %arg8[%c16_64, %c0_65] : memref<112x128xf32, #tpu.memory_space<vmem>>, vector<80x128xf32>
    %c512 = arith.constant 512 : index
    %c0_66 = arith.constant 0 : index
    %75 = vector.load %arg4[%c512, %c0_66] : memref<1152x128xf32, #tpu.memory_space<vmem>>, vector<128x128xf32>
    %cst_67 = arith.constant dense<0.000000e+00> : vector<80x128xf32>
    %76 = tpu.matmul %74, %75, %cst_67 {dimension_numbers = #tpu.dot_dimension_numbers<[1], [0], [0], [1], [0, 0, 1, 1], [], []>} : vector<80x128xf32>, vector<128x128xf32>, vector<80x128xf32> -> vector<80x128xf32>
    %77 = arith.addf %73, %76 : vector<80x128xf32>
    %c17_68 = arith.constant 17 : index
    %c0_69 = arith.constant 0 : index
    %78 = vector.load %arg8[%c17_68, %c0_69] : memref<112x128xf32, #tpu.memory_space<vmem>>, vector<80x128xf32>
    %c640 = arith.constant 640 : index
    %c0_70 = arith.constant 0 : index
    %79 = vector.load %arg4[%c640, %c0_70] : memref<1152x128xf32, #tpu.memory_space<vmem>>, vector<128x128xf32>
    %cst_71 = arith.constant dense<0.000000e+00> : vector<80x128xf32>
    %80 = tpu.matmul %78, %79, %cst_71 {dimension_numbers = #tpu.dot_dimension_numbers<[1], [0], [0], [1], [0, 0, 1, 1], [], []>} : vector<80x128xf32>, vector<128x128xf32>, vector<80x128xf32> -> vector<80x128xf32>
    %81 = arith.addf %77, %80 : vector<80x128xf32>
    %c25_72 = arith.constant 25 : index
    %c0_73 = arith.constant 0 : index
    %82 = vector.load %arg8[%c25_72, %c0_73] : memref<112x128xf32, #tpu.memory_space<vmem>>, vector<80x128xf32>
    %c768 = arith.constant 768 : index
    %c0_74 = arith.constant 0 : index
    %83 = vector.load %arg4[%c768, %c0_74] : memref<1152x128xf32, #tpu.memory_space<vmem>>, vector<128x128xf32>
    %cst_75 = arith.constant dense<0.000000e+00> : vector<80x128xf32>
    %84 = tpu.matmul %82, %83, %cst_75 {dimension_numbers = #tpu.dot_dimension_numbers<[1], [0], [0], [1], [0, 0, 1, 1], [], []>} : vector<80x128xf32>, vector<128x128xf32>, vector<80x128xf32> -> vector<80x128xf32>
    %85 = arith.addf %81, %84 : vector<80x128xf32>
    %c26_76 = arith.constant 26 : index
    %c0_77 = arith.constant 0 : index
    %86 = vector.load %arg8[%c26_76, %c0_77] : memref<112x128xf32, #tpu.memory_space<vmem>>, vector<80x128xf32>
    %c896 = arith.constant 896 : index
    %c0_78 = arith.constant 0 : index
    %87 = vector.load %arg4[%c896, %c0_78] : memref<1152x128xf32, #tpu.memory_space<vmem>>, vector<128x128xf32>
    %cst_79 = arith.constant dense<0.000000e+00> : vector<80x128xf32>
    %88 = tpu.matmul %86, %87, %cst_79 {dimension_numbers = #tpu.dot_dimension_numbers<[1], [0], [0], [1], [0, 0, 1, 1], [], []>} : vector<80x128xf32>, vector<128x128xf32>, vector<80x128xf32> -> vector<80x128xf32>
    %89 = arith.addf %85, %88 : vector<80x128xf32>
    %c27_80 = arith.constant 27 : index
    %c0_81 = arith.constant 0 : index
    %90 = vector.load %arg8[%c27_80, %c0_81] : memref<112x128xf32, #tpu.memory_space<vmem>>, vector<80x128xf32>
    %c1024 = arith.constant 1024 : index
    %c0_82 = arith.constant 0 : index
    %91 = vector.load %arg4[%c1024, %c0_82] : memref<1152x128xf32, #tpu.memory_space<vmem>>, vector<128x128xf32>
    %cst_83 = arith.constant dense<0.000000e+00> : vector<80x128xf32>
    %92 = tpu.matmul %90, %91, %cst_83 {dimension_numbers = #tpu.dot_dimension_numbers<[1], [0], [0], [1], [0, 0, 1, 1], [], []>} : vector<80x128xf32>, vector<128x128xf32>, vector<80x128xf32> -> vector<80x128xf32>
    %93 = arith.addf %89, %92 : vector<80x128xf32>
    %c0_84 = arith.constant 0 : index
    %c0_85 = arith.constant 0 : index
    %94 = vector.load %arg6[%c0_84, %c0_85] : memref<1x128xf32, #tpu.memory_space<vmem>>, vector<1x128xf32>
    %95 = vector.broadcast %94 : vector<1x128xf32> to vector<80x128xf32>
    %96 = arith.addf %93, %95 : vector<80x128xf32>
    %cst_86 = arith.constant 0.000000e+00 : f32
    %97 = vector.broadcast %cst_86 : f32 to vector<80x128xf32>
    %98 = arith.maximumf %96, %97 : vector<80x128xf32>
    %c0_87 = arith.constant 0 : index
    %c0_88 = arith.constant 0 : index
    %c0_89 = arith.constant 0 : index
    %99 = vector.load %arg7[%c0_87, %c0_88, %c0_89] : memref<1x80x128xf32, #tpu.memory_space<vmem>>, vector<1x80x128xf32>
    %100 = vector.shape_cast %99 : vector<1x80x128xf32> to vector<80x128xf32>
    %101 = vector.shape_cast %98 : vector<80x128xf32> to vector<1x80x128xf32>
    tpu.vector_store %arg7[%c0_87, %c0_88, %c0_89], %101 {strides = array<i32>} : memref<1x80x128xf32, #tpu.memory_space<vmem>>, vector<1x80x128xf32>,
    return
  }
  func.func @transform_0(%arg0: i32) -> (i32, i32, i32) {
    %c0_i32 = arith.constant 0 : i32
    %c0_i32_0 = arith.constant 0 : i32
    %c0_i32_1 = arith.constant 0 : i32
    return %arg0, %c0_i32, %c0_i32_0 : i32, i32, i32
  }
  func.func @transform_1(%arg0: i32) -> (i32, i32) {
    %c0_i32 = arith.constant 0 : i32
    %c0_i32_0 = arith.constant 0 : i32
    %c0_i32_1 = arith.constant 0 : i32
    return %c0_i32, %c0_i32_0 : i32, i32
  }
  func.func @transform_2(%arg0: i32) -> (i32, i32) {
    %c0_i32 = arith.constant 0 : i32
    %c0_i32_0 = arith.constant 0 : i32
    %c0_i32_1 = arith.constant 0 : i32
    return %c0_i32, %c0_i32_0 : i32, i32
  }
  func.func @transform_3(%arg0: i32) -> (i32, i32) {
    %c0_i32 = arith.constant 0 : i32
    %c0_i32_0 = arith.constant 0 : i32
    %c0_i32_1 = arith.constant 0 : i32
    return %c0_i32, %c0_i32_0 : i32, i32
  }
  func.func @transform_4(%arg0: i32) -> (i32, i32) {
    %c0_i32 = arith.constant 0 : i32
    %c0_i32_0 = arith.constant 0 : i32
    %c0_i32_1 = arith.constant 0 : i32
    return %c0_i32, %c0_i32_0 : i32, i32
  }
  func.func @transform_5(%arg0: i32) -> (i32, i32) {
    %c0_i32 = arith.constant 0 : i32
    %c0_i32_0 = arith.constant 0 : i32
    %c0_i32_1 = arith.constant 0 : i32
    return %c0_i32, %c0_i32_0 : i32, i32
  }
  func.func @transform_6(%arg0: i32) -> (i32, i32, i32) {
    %c0_i32 = arith.constant 0 : i32
    %c0_i32_0 = arith.constant 0 : i32
    %c0_i32_1 = arith.constant 0 : i32
    return %arg0, %c0_i32, %c0_i32_0 : i32, i32, i32
  }
}

</mosaic_0001>

<bundles_post_ra>
// kernel: tile.13
= control target key start
LH: loop header
LB: loop body
LE: loop exit
PB: predicated region body
PF: predicated region fallthrough
CT: control target
= control target key end

     0   :  { %s22_s0 = inlined_call_operand.vmem [shape: f32[8], index: 0, kind: input, shape index: {}]   ;;  %s23_s1 = inlined_call_operand.vmem [shape: f32[8,8], index: 1, kind: output, shape index: {}]  }
   0x1   :  { %v4_v0 = vld [vmem:[%s22_s0] ss:$0 sm:$0xff] }
   0x2   :  { %5 = vst [vmem:[%s23_s1] sm:$0xff] %v4_v0 }

// kernel: conv_block_forward.1
= control target key start
LH: loop header
LB: loop body
LE: loop exit
PB: predicated region body
PF: predicated region fallthrough
CT: control target
= control target key end

     0   :  { %s2256_s21 = smov 0   ;;  %s3330_s0 = inlined_call_operand.vmem [shape: f32[2,112,40], index: 0, kind: input, shape index: {}]   ;;  %s3331_s1 = inlined_call_operand.vmem [shape: f32[80,1], index: 1, kind: input, shape index: {}]   ;;  %s3332_s2 = inlined_call_operand.vmem [shape: f32[360,128], index: 2, kind: input, shape index: {}]   ;;  %s3333_s3 = inlined_call_operand.vmem [shape: f32[1152,128], index: 3, kind: input, shape index: {}]   ;;  %s3334_s4 = inlined_call_operand.vmem [shape: f32[1,128], index: 4, kind: input, shape index: {}]   ;;  %s3335_s5 = inlined_call_operand.vmem [shape: f32[1,128], index: 5, kind: input, shape index: {}]   ;;  %s3336_s6 = inlined_call_operand.vmem [shape: f32[2,80,128], index: 6, kind: output, shape index: {}]  }
   0x1 LB: > { %s2085_s22 = sadd.s32 4294967295, %s2217_s21   ;;  %p2089_p0 = scmp.ge.s32.totalorder %s2217_s21, 1  ;;  %s2217_s21 = sphi %s2256_s21, %s16_s21  }
   0x2   : > { %p212_p1 = scmp.lt.s32.totalorder %s2217_s21, 3 }
   0x4   : > { %p213_p2 = pnand %p2089_p0, %p212_p1 }
   0x5   : > { %p242_p3 = scmp.lt.s32.totalorder (!%p213_p2), %s2085_s22, 1 }
   0x6   : > { %216 = sbr.rel (%p213_p2) target bundleno = 650 (0x28a), region = 44 }
   0xb   : > { %v305_v0 = vld [vmem:[%s3332_s2 + $0x48] sm:$0xff]  ;;  %v290_v1 = vld [vmem:[%s3332_s2 + $0x20] sm:$0xff]  ;;  %v289_v3 = vld [vmem:[%s3332_s2 + $0x18] sm:$0xff]  ;;  %s3338_s22 = smov (!%p242_p3, %s2085_s22), 1  ;;  %vm306_vm0 = vcmask 326656  }
   0xc   : > { %v304_v2 = vld [vmem:[%s3332_s2 + $0x40] sm:$0xff]  ;;  %2184 = vmatpush.msra.mxu2 %v305_v0  ;;  %2189 = vmatpush.msra.mxu3 %v290_v1  ;;  %v303_v4 = vld [vmem:[%s3332_s2 + $0x38] sm:$0xff]  ;;  %v288_v5 = vld [vmem:[%s3332_s2 + $0x10] sm:$0xff]  ;;  %s2194_s15 = smul.u32 112, %s3338_s22 }
   0xd   : > { %348 = vmatpush.msra.mxu0 %v305_v0  ;;  %425 = vmatpush.msra.mxu1 %v290_v1  ;;  %v302_v6 = vld [vmem:[%s3332_s2 + $0x30] sm:$0xff]  ;;  %v287_v7 = vld [vmem:[%s3332_s2 + $0x8] sm:$0xff]  ;;  %v286_v9 = vld [vmem:[%s3332_s2] sm:$0xff]  ;;  %s2195_s13 = smul.u32 80, %s3338_s22 }
   0xe   : > { %2185 = vmatpush.msra.mxu2 %v304_v2  ;;  %2190 = vmatpush.msra.mxu3 %v289_v3  ;;  %v301_v8 = vld [vmem:[%s3332_s2 + $0x28] sm:$0xff]  ;;  %s2300_s24 = scalar_lea.vmem %s3330_s0, %s2194_s15  ;;  %v475_v12 = vld [vmem:[%s3332_s2 + $0x70] sm:$0xff]  ;;  %v577_v13 = vld [vmem:[%s3332_s2 + $0x98] sm:$0xff] }
   0xf   : > { %349 = vmatpush.msra.mxu0 %v304_v2  ;;  %426 = vmatpush.msra.mxu1 %v289_v3  ;;  %v296_v10 = vld [vmem:[%s2300_s24 + $0x2e] sm:$0xff]  ;;  %v291_v15 = vld [vmem:[%s2300_s24 + $0x6] sm:$0xff]  ;;  %v678_v21 = vld [vmem:[%s3332_s2 + $0xb8] sm:$0xff]  ;;  %s3301_s16 = scalar_lea.vmem %s3336_s6, %s2195_s13 }
  0x10   : > { %2186 = vmatpush.msra.mxu2 %v303_v4  ;;  %2191 = vmatpush.msra.mxu3 %v288_v5  ;;  %v281_v11 = vld [vmem:[%s2300_s24 + $0x2d] sm:$0xff]  ;;  %v276_v16 = vld [vmem:[%s2300_s24 + $0x5] sm:$0xff]  ;;  %v472_v22 = vld [vmem:[%s3332_s2 + $0x58] sm:$0xff] }
  0x11   : > { %350 = vmatpush.msra.mxu0 %v303_v4  ;;  %427 = vmatpush.msra.mxu1 %v288_v5  ;;  %v474_v14 = vld [vmem:[%s3332_s2 + $0x68] sm:$0xff]  ;;  %v576_v17 = vld [vmem:[%s3332_s2 + $0x90] sm:$0xff]  ;;  %v679_v18 = vld [vmem:[%s3332_s2 + $0xc0] sm:$0xff] }
  0x12   : > { %2187 = vmatpush.msra.mxu2 %v302_v6  ;;  %2192 = vmatpush.msra.mxu3 %v287_v7  ;;  %v473_v19 = vld [vmem:[%s3332_s2 + $0x60] sm:$0xff]  ;;  %v575_v20 = vld [vmem:[%s3332_s2 + $0x88] sm:$0xff]  ;;  %v297_v23 = vld [vmem:[%s2300_s24 + $0x36] sm:$0xff] }
  0x13   : > { %351 = vmatpush.msra.mxu0 %v302_v6  ;;  %428 = vmatpush.msra.mxu1 %v287_v7  ;;  %v282_v24 = vld [vmem:[%s2300_s24 + $0x35] sm:$0xff]  ;;  %v574_v25 = vld [vmem:[%s3332_s2 + $0x80] sm:$0xff]  ;;  %v277_v30 = vld [vmem:[%s2300_s24 + $0xd] sm:$0xff] }
  0x14   : > { %2188 = vmatpush.msra.mxu2 %v301_v8  ;;  %2193 = vmatpush.msra.mxu3 %v286_v9  ;;  %v677_v26 = vld [vmem:[%s3332_s2 + $0xb0] sm:$0xff]  ;;  %v573_v29 = vld [vmem:[%s3332_s2 + $0x78] sm:$0xff]  ;;  %v676_v31 = vld [vmem:[%s3332_s2 + $0xa8] sm:$0xff] }
  0x15   : > { %2097 = vmatmul.msk.f32.vlgmr.msra.gmra.mxu2 %vm306_vm0, %v296_v10  ;;  %2107 = vmatmul.msk.f32.vlgmr.msra.gmra.mxu3 %vm306_vm0, %v281_v11  ;;  %v471_v27 = vld [vmem:[%s3332_s2 + $0x50] sm:$0xff]  ;;  %v985_v33 = vld [vmem:[%s3332_s2 + $0x138] sm:$0xff]  ;;  %v675_v34 = vld [vmem:[%s3332_s2 + $0xa0] sm:$0xff] }
  0x16   : > { %517 = vmatpush.msrb.mxu2 %v475_v12  ;;  %619 = vmatpush.msrb.mxu3 %v577_v13  ;;  %v292_v28 = vld [vmem:[%s2300_s24 + $0xe] sm:$0xff]  ;;  %v298_v36 = vld [vmem:[%s2300_s24 + $0x3e] sm:$0xff]  ;;  %v293_v39 = vld [vmem:[%s2300_s24 + $0x16] sm:$0xff] }
  0x17   : > { %352 = vmatpush.msra.mxu0 %v301_v8  ;;  %429 = vmatpush.msra.mxu1 %v286_v9  ;;  %v883_v32 = vld [vmem:[%s3332_s2 + $0x110] sm:$0xff]  ;;  %v781_v35 = vld [vmem:[%s3332_s2 + $0xe8] sm:$0xff]  ;;  %v283_v37 = vld [vmem:[%s2300_s24 + $0x3d] sm:$0xff] }
  0x18   : > { %518 = vmatpush.msrb.mxu2 %v474_v14  ;;  %2092 = vmatmul.msk.f32.vlgmr.msra.gmra.mxu0 %vm306_vm0, %v291_v15  ;;  %v780_v38 = vld [vmem:[%s3332_s2 + $0xe0] sm:$0xff]  ;;  %v779_v40 = vld [vmem:[%s3332_s2 + $0xd8] sm:$0xff]  ;;  %v778_v43 = vld [vmem:[%s3332_s2 + $0xd0] sm:$0xff] }
  0x19   : > { %2102 = vmatmul.msk.f32.vlgmr.msra.gmra.mxu1 %vm306_vm0, %v276_v16  ;;  %620 = vmatpush.msrb.mxu3 %v576_v17  ;;  %v278_v41 = vld [vmem:[%s2300_s24 + $0x15] sm:$0xff]  ;;  %v1087_v42 = vld [vmem:[%s3332_s2 + $0x160] sm:$0xff]  ;;  %v777_v44 = vld [vmem:[%s3332_s2 + $0xc8] sm:$0xff] }
  0x1a   : > { %721 = vmatpush.msrb.mxu0 %v679_v18  ;;  %519 = vmatpush.msrb.mxu2 %v473_v19  ;;  %v299_v45 = vld [vmem:[%s2300_s24 + $0x46] sm:$0xff]  ;;  %v294_v47 = vld [vmem:[%s2300_s24 + $0x1e] sm:$0xff]  ;;  %v984_v50 = vld [vmem:[%s3332_s2 + $0x130] sm:$0xff] }
  0x1b   : > { %621 = vmatpush.msrb.mxu3 %v575_v20  ;;  %823 = vmatpush.msrb.mxu1 %v781_v35  ;;  %v284_v46 = vld [vmem:[%s2300_s24 + $0x45] sm:$0xff]  ;;  %v279_v49 = vld [vmem:[%s2300_s24 + $0x1d] sm:$0xff]  ;;  %v300_v51 = vld [vmem:[%s2300_s24 + $0x4e] sm:$0xff] }
  0x1c   : > { %722 = vmatpush.msrb.mxu0 %v678_v21  ;;  %520 = vmatpush.msrb.mxu2 %v472_v22  ;;  %v882_v48 = vld [vmem:[%s3332_s2 + $0x108] sm:$0xff]  ;;  %v1086_v54 = vld [vmem:[%s3332_s2 + $0x158] sm:$0xff]  ;;  %v665_v58 = vld [vmem:[%s2300_s24 + $0x10] sm:$0xff] }
  0x1d   : > { %2098 = vmatmul.msk.f32.gmra.mxu2 %vm306_vm0, %v297_v23  ;;  %2108 = vmatmul.msk.f32.gmra.mxu3 %vm306_vm0, %v282_v24  ;;  %v285_v52 = vld [vmem:[%s2300_s24 + $0x4d] sm:$0xff]  ;;  %v280_v55 = vld [vmem:[%s2300_s24 + $0x25] sm:$0xff]  ;;  %v564_v62 = vld [vmem:[%s2300_s24 + $0x17] sm:$0xff]  ;;  %v2219_v24 = vmov 0  }
  0x1e   : > { %622 = vmatpush.msrb.mxu3 %v574_v25  ;;  %723 = vmatpush.msrb.mxu0 %v677_v26  ;;  %v295_v53 = vld [vmem:[%s2300_s24 + $0x26] sm:$0xff]  ;;  %v563_v57 = vld [vmem:[%s2300_s24 + $0xf] sm:$0xff]  ;;  %v666_v63 = vld [vmem:[%s2300_s24 + $0x18] sm:$0xff] }
  0x1f   : > { %521 = vmatpush.msrb.mxu2 %v471_v27  ;;  %824 = vmatpush.msrb.mxu1 %v780_v38  ;;  %v461_v56 = vld [vmem:[%s2300_s24 + $0x7] sm:$0xff]  ;;  %v767_v60 = vld [vmem:[%s2300_s24 + $0x11] sm:$0xff]  ;;  %v2442_v1 = vld [vmem:[%s2300_s24 + $0x19] sm:$0xff] }
  0x20   : > { %2093 = vmatmul.msk.f32.gmra.mxu0 %vm306_vm0, %v292_v28  ;;  %623 = vmatpush.msrb.mxu3 %v573_v29  ;;  %v881_v59 = vld [vmem:[%s3332_s2 + $0x100] sm:$0xff]  ;;  %v983_v61 = vld [vmem:[%s3332_s2 + $0x128] sm:$0xff]  ;;  %v1085_v0 = vld [vmem:[%s3332_s2 + $0x150] sm:$0xff] }
  0x21   : > { %2103 = vmatmul.msk.f32.gmra.mxu1 %vm306_vm0, %v277_v30  ;;  %724 = vmatpush.msrb.mxu0 %v676_v31  ;;  %v565_v2 = vld [vmem:[%s2300_s24 + $0x1f] sm:$0xff]  ;;  %v566_v7 = vld [vmem:[%s2300_s24 + $0x27] sm:$0xff]  ;;  %v567_v11 = vld [vmem:[%s2300_s24 + $0x2f] sm:$0xff] }
  0x22   : > { %925 = vmatpush.msra.mxu2 %v883_v32  ;;  %1027 = vmatpush.msra.mxu3 %v985_v33  ;;  %v667_v3 = vld [vmem:[%s2300_s24 + $0x20] sm:$0xff]  ;;  %v880_v4 = vld [vmem:[%s3332_s2 + $0xf8] sm:$0xff]  ;;  %v668_v8 = vld [vmem:[%s2300_s24 + $0x28] sm:$0xff] }
  0x23   : > { %725 = vmatpush.msrb.mxu0 %v675_v34  ;;  %825 = vmatpush.msrb.mxu1 %v779_v40  ;;  %v2455_v5 = vld [vmem:[%s2300_s24 + $0x21] sm:$0xff]  ;;  %v2471_v10 = vld [vmem:[%s2300_s24 + $0x29] sm:$0xff]  ;;  %v2484_v14 = vld [vmem:[%s2300_s24 + $0x31] sm:$0xff] }
  0x24   : > { %926 = vmatpush.msra.mxu2 %v882_v48  ;;  %1028 = vmatpush.msra.mxu3 %v984_v50  ;;  %v982_v6 = vld [vmem:[%s3332_s2 + $0x120] sm:$0xff]  ;;  %v1084_v9 = vld [vmem:[%s3332_s2 + $0x148] sm:$0xff]  ;;  %v669_v12 = vld [vmem:[%s2300_s24 + $0x30] sm:$0xff] }
  0x25   : > { %2099 = vmatmul.msk.f32.gmra.mxu2 %vm306_vm0, %v298_v36  ;;  %2109 = vmatmul.msk.f32.gmra.mxu3 %vm306_vm0, %v283_v37  ;;  %v879_v13 = vld [vmem:[%s3332_s2 + $0xf0] sm:$0xff]  ;;  %v981_v15 = vld [vmem:[%s3332_s2 + $0x118] sm:$0xff]  ;;  %v1083_v18 = vld [vmem:[%s3332_s2 + $0x140] sm:$0xff] }
  0x26   : > { %1129 = vmatpush.msra.mxu0 %v1087_v42  ;;  %826 = vmatpush.msrb.mxu1 %v778_v43  ;;  %v568_v16 = vld [vmem:[%s2300_s24 + $0x37] sm:$0xff]  ;;  %v569_v20 = vld [vmem:[%s2300_s24 + $0x3f] sm:$0xff]  ;;  %v570_v25 = vld [vmem:[%s2300_s24 + $0x47] sm:$0xff] }
  0x27   : > { %927 = vmatpush.msra.mxu2 %v881_v59  ;;  %1029 = vmatpush.msra.mxu3 %v983_v61  ;;  %v670_v17 = vld [vmem:[%s2300_s24 + $0x38] sm:$0xff]  ;;  %v671_v21 = vld [vmem:[%s2300_s24 + $0x40] sm:$0xff]  ;;  %v672_v26 = vld [vmem:[%s2300_s24 + $0x48] sm:$0xff] }
  0x28   : > { %2094 = vmatmul.msk.f32.gmra.mxu0 %vm306_vm0, %v293_v39  ;;  %827 = vmatpush.msrb.mxu1 %v777_v44  ;;  %v2500_v19 = vld [vmem:[%s2300_s24 + $0x39] sm:$0xff]  ;;  %v2513_v23 = vld [vmem:[%s2300_s24 + $0x41] sm:$0xff]  ;;  %v2526_v28 = vld [vmem:[%s2300_s24 + $0x49] sm:$0xff] }
  0x29   : > { %2104 = vmatmul.msk.f32.gmra.mxu1 %vm306_vm0, %v278_v41  ;;  %1130 = vmatpush.msra.mxu0 %v1086_v54  ;;  %v252_v22 = vld [vmem:[%s3331_s1] sm:$0xff]  ;;  %v253_v27 = vld [vmem:[%s3331_s1 + $0x8] sm:$0xff]  ;;  %v673_v30 = vld [vmem:[%s2300_s24 + $0x50] sm:$0xff] }
  0x2a   : > { %928 = vmatpush.msra.mxu2 %v880_v4  ;;  %1030 = vmatpush.msra.mxu3 %v982_v6  ;;  %v571_v29 = vld [vmem:[%s2300_s24 + $0x4f] sm:$0xff]  ;;  %v572_v33 = vld [vmem:[%s2300_s24 + $0x57] sm:$0xff]  ;;  %v972_v41 = vld [vmem:[%s2300_s24 + $0x22] sm:$0xff] }
  0x2b   : > { %1131 = vmatpush.msra.mxu0 %v1085_v0  ;;  %2206 = vset.pattern.permute.xlu0 %v2219_v24  ;;  %v258_v31 = vld [vmem:[%s3331_s1 + $0x30] sm:$0xff]  ;;  %v674_v34 = vld [vmem:[%s2300_s24 + $0x58] sm:$0xff]  ;;  %v261_v37 = vld [vmem:[%s3331_s1 + $0x48] sm:$0xff] }
  0x2c   : > { %929 = vmatpush.msra.mxu2 %v879_v13  ;;  %1031 = vmatpush.msra.mxu3 %v981_v15  ;;  %v2539_v32 = vld [vmem:[%s2300_s24 + $0x51] sm:$0xff]  ;;  %v2552_v36 = vld [vmem:[%s2300_s24 + $0x59] sm:$0xff]  ;;  %v1074_v43 = vld [vmem:[%s2300_s24 + $0x23] sm:$0xff] }
  0x2d   : > { %2100 = vmatmul.msk.f32.gmra.mxu2 %vm306_vm0, %v299_v45  ;;  %2110 = vmatmul.msk.f32.gmra.mxu3 %vm306_vm0, %v284_v46  ;;  %v254_v35 = vld [vmem:[%s3331_s1 + $0x10] sm:$0xff]  ;;  %v971_v38 = vld [vmem:[%s2300_s24 + $0x1a] sm:$0xff]  ;;  %v1078_v4 = vld [vmem:[%s2300_s24 + $0x43] sm:$0xff] }
  0x2e   : > { %1132 = vmatpush.msra.mxu0 %v1084_v9  ;;  %2207 = vset.pattern.permute.xlu1 %v2219_v24  ;;  %v1073_v39 = vld [vmem:[%s2300_s24 + $0x1b] sm:$0xff]  ;;  %v973_v48 = vld [vmem:[%s2300_s24 + $0x2a] sm:$0xff] }
  0x2f   : > { %1201 = vperm.xlu0 %2206, %v252_v22   ;;  %2208 = vset.pattern.permute.xlu2 %v2219_v24  ;;  %v255_v40 = vld [vmem:[%s3331_s1 + $0x18] sm:$0xff]  ;;  %v1075_v50 = vld [vmem:[%s2300_s24 + $0x2b] sm:$0xff]  ;;  %v260_v13 = vld [vmem:[%s3331_s1 + $0x40] sm:$0xff] }
  0x30   : > { %2095 = vmatmul.msk.f32.gmra.mxu0 %vm306_vm0, %v294_v47  ;;  %1211 = vperm.xlu1 %2207, %v254_v35   ;;  %v259_v44 = vld [vmem:[%s3331_s1 + $0x38] sm:$0xff]  ;;  %v257_v6 = vld [vmem:[%s3331_s1 + $0x28] sm:$0xff] }
  0x31   : > { %2105 = vmatmul.msk.f32.gmra.mxu1 %vm306_vm0, %v279_v49  ;;  %1133 = vmatpush.msra.mxu0 %v1083_v18  ;;  %v1320_v61 = vld [vmem:[%s3333_s3 + $0xf8] sm:$0xff]  ;;  %v977_v9 = vld [vmem:[%s2300_s24 + $0x4a] sm:$0xff] }
  0x32   : > { %1321 = vmatpush.msra.mxu1 %v1320_v61  ;;  %v979_v24 = vld [vmem:[%s2300_s24 + $0x5a] sm:$0xff]  ;;  %v1082_v35 = vld [vmem:[%s2300_s24 + $0x63] sm:$0xff] }
  0x35   : > { %2101 = vmatmul.msk.f32.gmra.mxu2 %vm306_vm0, %v300_v51  ;;  %2111 = vmatmul.msk.f32.gmra.mxu3 %vm306_vm0, %v285_v52 }
  0x37   : > { %1206 = vperm.xlu0 %2206, %v253_v27   ;;  %v1081_v27 = vld [vmem:[%s2300_s24 + $0x5b] sm:$0xff] }
  0x38   : > { %2096 = vmatmul.msk.f32.gmra.mxu0 %vm306_vm0, %v295_v53  ;;  %1216 = vperm.xlu1 %2207, %v255_v40   ;;  %v974_v53 = vld [vmem:[%s2300_s24 + $0x32] sm:$0xff] }
  0x39   : > { %2106 = vmatmul.msk.f32.gmra.mxu1 %vm306_vm0, %v280_v55  ;;  %v1076_v55 = vld [vmem:[%s2300_s24 + $0x33] sm:$0xff] }
  0x3a   : > { %v1293_v40 = vld [vmem:[%s3333_s3 + $0x70] sm:$0xff] }
  0x3d   : > { %2112 = vmatmul.msk.f32.vlgmr.msrb.gmra.mxu2 %vm306_vm0, %v461_v56  ;;  %2122 = vmatmul.msk.f32.vlgmr.msrb.gmra.mxu3 %vm306_vm0, %v563_v57 }
  0x3f   : > { %1231 = vperm.xlu0 %2206, %v258_v31   ;;  %v878_v31 = vld [vmem:[%s2300_s24 + $0x61] sm:$0xff] }
  0x40   : > { %2132 = vmatmul.msk.f32.vlgmr.msrb.gmra.mxu0 %vm306_vm0, %v665_v58  ;;  %1236 = vperm.xlu1 %2207, %v259_v44   ;;  %v975_v58 = vld [vmem:[%s2300_s24 + $0x3a] sm:$0xff]  ;;  %v1292_v44 = vld [vmem:[%s3333_s3 + $0x68] sm:$0xff] }
  0x41   : > { %2142 = vmatmul.msk.f32.vlgmr.msrb.gmra.mxu1 %vm306_vm0, %v767_v60  ;;  %v1077_v60 = vld [vmem:[%s2300_s24 + $0x3b] sm:$0xff] }
  0x45   : > { %2113 = vmatmul.msk.f32.gmra.mxu2 %vm306_vm0, %v563_v57  ;;  %2123 = vmatmul.msk.f32.gmra.mxu3 %vm306_vm0, %v564_v62 }
  0x47   : > { %1246 = vperm.xlu0 %2206, %v261_v37   ;;  %v1294_v37 = vld [vmem:[%s3333_s3 + $0x78] sm:$0xff] }
  0x48   : > { %2133 = vmatmul.msk.f32.gmra.mxu0 %vm306_vm0, %v666_v63  ;;  %1368 = vmatpush.msrb.mxu2 %v1294_v37  ;;  %v1520_v37 = vld [vmem:[%s3333_s3 + $0x1e0] sm:$0xff] }
  0x49   : > { %2143 = vmatmul.msk.f32.gmra.mxu1 %vm306_vm0, %v2442_v1 }
  0x4a   : > { %1369 = vmatpush.msrb.mxu2 %v1293_v40 }
  0x4c   : > { %1370 = vmatpush.msrb.mxu2 %v1292_v44  ;;  %v1519_v44 = vld [vmem:[%s3333_s3 + $0x1d8] sm:$0xff] }
  0x4d   : > { %2114 = vmatmul.msk.f32.gmra.mxu2 %vm306_vm0, %v564_v62  ;;  %2124 = vmatmul.msk.f32.gmra.mxu3 %vm306_vm0, %v565_v2  ;;  %v256_v62 = vld [vmem:[%s3331_s1 + $0x20] sm:$0xff] }
  0x4e   : > { %1221 = vperm.xlu2 %2208, %v256_v62  }
  0x50   : > { %2134 = vmatmul.msk.f32.gmra.mxu0 %vm306_vm0, %v667_v3 }
  0x51   : > { %2144 = vmatmul.msk.f32.gmra.mxu1 %vm306_vm0, %v2455_v5 }
  0x55   : > { %2115 = vmatmul.msk.f32.gmra.mxu2 %vm306_vm0, %v565_v2  ;;  %2125 = vmatmul.msk.f32.gmra.mxu3 %vm306_vm0, %v566_v7  ;;  %v1319_v2 = vld [vmem:[%s3333_s3 + $0xf0] sm:$0xff] }
  0x56   : > { %1322 = vmatpush.msra.mxu1 %v1319_v2  ;;  %1226 = vperm.xlu2 %2208, %v257_v6   ;;  %v1436_v2 = vld [vmem:[%s3333_s3 + $0x158] sm:$0xff] }
  0x58   : > { %2135 = vmatmul.msk.f32.gmra.mxu0 %vm306_vm0, %v668_v8 }
  0x59   : > { %2145 = vmatmul.msk.f32.gmra.mxu1 %vm306_vm0, %v2471_v10 }
  0x5d   : > { %2116 = vmatmul.msk.f32.gmra.mxu2 %vm306_vm0, %v566_v7  ;;  %2126 = vmatmul.msk.f32.gmra.mxu3 %vm306_vm0, %v567_v11 }
  0x5e   : > { %1241 = vperm.xlu2 %2208, %v260_v13   ;;  %v1523_v13 = vld [vmem:[%s3333_s3 + $0x1f8] sm:$0xff] }
  0x5f   : > { %1524 = vmatpush.msrb.mxu0 %v1523_v13  ;;  %v1427_v13 = vld [vmem:[%s3333_s3 + $0x110] sm:$0xff] }
  0x60   : > { %2136 = vmatmul.msk.f32.gmra.mxu0 %vm306_vm0, %v669_v12  ;;  %v1317_v12 = vld [vmem:[%s3333_s3 + $0xe0] sm:$0xff] }
  0x61   : > { %2146 = vmatmul.msk.f32.gmra.mxu1 %vm306_vm0, %v2484_v14 }
  0x65   : > { %2117 = vmatmul.msk.f32.gmra.mxu2 %vm306_vm0, %v567_v11  ;;  %2127 = vmatmul.msk.f32.gmra.mxu3 %vm306_vm0, %v568_v16  ;;  %v1079_v11 = vld [vmem:[%s2300_s24 + $0x4b] sm:$0xff] }
  0x68   : > { %2137 = vmatmul.msk.f32.gmra.mxu0 %vm306_vm0, %v670_v17  ;;  %v978_v17 = vld [vmem:[%s2300_s24 + $0x52] sm:$0xff] }
  0x69   : > { %2147 = vmatmul.msk.f32.gmra.mxu1 %vm306_vm0, %v2500_v19 }
  0x6d   : > { %2118 = vmatmul.msk.f32.gmra.mxu2 %vm306_vm0, %v568_v16  ;;  %2128 = vmatmul.msk.f32.gmra.mxu3 %vm306_vm0, %v569_v20  ;;  %v1316_v16 = vld [vmem:[%s3333_s3 + $0xd8] sm:$0xff] }
  0x70   : > { %2138 = vmatmul.msk.f32.gmra.mxu0 %vm306_vm0, %v671_v21 }
  0x71   : > { %2148 = vmatmul.msk.f32.gmra.mxu1 %vm306_vm0, %v2513_v23 }
  0x75   : > { %2119 = vmatmul.msk.f32.gmra.mxu2 %vm306_vm0, %v569_v20  ;;  %2129 = vmatmul.msk.f32.gmra.mxu3 %vm306_vm0, %v570_v25  ;;  %v1315_v20 = vld [vmem:[%s3333_s3 + $0xd0] sm:$0xff] }
  0x78   : > { %2139 = vmatmul.msk.f32.gmra.mxu0 %vm306_vm0, %v672_v26 }
  0x79   : > { %2149 = vmatmul.msk.f32.gmra.mxu1 %vm306_vm0, %v2526_v28 }
  0x7d   : > { %2120 = vmatmul.msk.f32.gmra.mxu2 %vm306_vm0, %v570_v25  ;;  %2130 = vmatmul.msk.f32.gmra.mxu3 %vm306_vm0, %v571_v29  ;;  %v1314_v25 = vld [vmem:[%s3333_s3 + $0xc8] sm:$0xff] }
  0x80   : > { %2140 = vmatmul.msk.f32.gmra.mxu0 %vm306_vm0, %v673_v30  ;;  %v1313_v30 = vld [vmem:[%s3333_s3 + $0xc0] sm:$0xff] }
  0x81   : > { %2150 = vmatmul.msk.f32.gmra.mxu1 %vm306_vm0, %v2539_v32 }
  0x85   : > { %2121 = vmatmul.msk.f32.gmra.mxu2 %vm306_vm0, %v571_v29  ;;  %2131 = vmatmul.msk.f32.gmra.mxu3 %vm306_vm0, %v572_v33 }
  0x88   : > { %2141 = vmatmul.msk.f32.gmra.mxu0 %vm306_vm0, %v674_v34 }
  0x89   : > { %2151 = vmatmul.msk.f32.gmra.mxu1 %vm306_vm0, %v2552_v36 }
  0x8d   : > { %2152 = vmatmul.msk.f32.vlgmr.msra.gmra.mxu2 %vm306_vm0, %v2442_v1  ;;  %2162 = vmatmul.msk.f32.vlgmr.msra.gmra.mxu3 %vm306_vm0, %v971_v38  ;;  %v976_v1 = vld [vmem:[%s2300_s24 + $0x42] sm:$0xff] }
  0x90   : > { %2172 = vmatmul.msk.f32.vlgmr.msra.gmra.mxu0 %vm306_vm0, %v1073_v39 }
  0x95   : > { %2153 = vmatmul.msk.f32.gmra.mxu2 %vm306_vm0, %v2455_v5  ;;  %2163 = vmatmul.msk.f32.gmra.mxu3 %vm306_vm0, %v972_v41  ;;  %v2573_v42 = vpop.f32.mrf.mxu0  ;;  %v1318_v5 = vld [vmem:[%s3333_s3 + $0xe8] sm:$0xff]  ;;  %v1440_v41 = vld [vmem:[%s3333_s3 + $0x178] sm:$0xff] }
  0x96   : > { %1323 = vmatpush.msra.mxu1 %v1318_v5  ;;  %1441 = vmatpush.msrb.mxu3 %v1440_v41  ;;  %v1435_v5 = vld [vmem:[%s3333_s3 + $0x150] sm:$0xff]  ;;  %v1283_v41 = vld [vmem:[%s3333_s3 + $0x20] sm:$0xff] }
  0x98   : > { %v369_v45 = vpop.f32.mrf.mxu2  ;;  %v446_v46 = vpop.f32.mrf.mxu3  ;;  %2173 = vmatmul.msk.f32.gmra.mxu0 %vm306_vm0, %v1074_v43  ;;  %1324 = vmatpush.msra.mxu1 %v1317_v12  ;;  %v1311_v43 = vld [vmem:[%s3333_s3 + $0xb0] sm:$0xff]  ;;  %v1434_v12 = vld [vmem:[%s3333_s3 + $0x148] sm:$0xff] }
  0x99   : > { %v2580_v47 = vadd.f32 %v446_v46, %v369_v45  ;;  %v1439_v45 = vld [vmem:[%s3333_s3 + $0x170] sm:$0xff] }
  0x9a   : > { %1325 = vmatpush.msra.mxu1 %v1316_v16  ;;  %1442 = vmatpush.msrb.mxu3 %v1439_v45  ;;  %v1307_v45 = vld [vmem:[%s3333_s3 + $0x90] sm:$0xff] }
  0x9c   : > { %1326 = vmatpush.msra.mxu1 %v1315_v20  ;;  %v1522_v20 = vld [vmem:[%s3333_s3 + $0x1f0] sm:$0xff] }
  0x9d   : > { %2154 = vmatmul.msk.f32.gmra.mxu2 %vm306_vm0, %v2471_v10  ;;  %2164 = vmatmul.msk.f32.gmra.mxu3 %vm306_vm0, %v973_v48  ;;  %v2586_v49 = vpop.f32.mrf.mxu0 }
  0x9e   : > { %1327 = vmatpush.msra.mxu1 %v1314_v25  ;;  %1525 = vmatpush.msrb.mxu0 %v1522_v20  ;;  %v1279_v20 = vld [vmem:[%s3333_s3] sm:$0xff] }
  0xa0   : > { %v2589_v51 = vpop.f32.mrf.mxu2  ;;  %v2591_v52 = vpop.f32.mrf.mxu3  ;;  %2174 = vmatmul.msk.f32.gmra.mxu0 %vm306_vm0, %v1075_v50  ;;  %1328 = vmatpush.msra.mxu1 %v1313_v30  ;;  %v1291_v50 = vld [vmem:[%s3333_s3 + $0x60] sm:$0xff]  ;;  %v1285_v30 = vld [vmem:[%s3333_s3 + $0x30] sm:$0xff] }
  0xa1   : > { %1371 = vmatpush.msrb.mxu2 %v1291_v50  ;;  %v1282_v50 = vld [vmem:[%s3333_s3 + $0x18] sm:$0xff] }
  0xa5   : > { %2155 = vmatmul.msk.f32.gmra.mxu2 %vm306_vm0, %v2484_v14  ;;  %2165 = vmatmul.msk.f32.gmra.mxu3 %vm306_vm0, %v974_v53  ;;  %v2598_v54 = vpop.f32.mrf.mxu0  ;;  %v1438_v53 = vld [vmem:[%s3333_s3 + $0x168] sm:$0xff] }
  0xa6   : > { %1443 = vmatpush.msrb.mxu3 %v1438_v53  ;;  %v1429_v53 = vld [vmem:[%s3333_s3 + $0x120] sm:$0xff] }
  0xa8   : > { %v2601_v56 = vpop.f32.mrf.mxu2  ;;  %v2603_v57 = vpop.f32.mrf.mxu3  ;;  %2175 = vmatmul.msk.f32.gmra.mxu0 %vm306_vm0, %v1076_v55  ;;  %v1310_v55 = vld [vmem:[%s3333_s3 + $0xa8] sm:$0xff] }
  0xad   : > { %2156 = vmatmul.msk.f32.gmra.mxu2 %vm306_vm0, %v2500_v19  ;;  %2166 = vmatmul.msk.f32.gmra.mxu3 %vm306_vm0, %v975_v58  ;;  %v2610_v59 = vpop.f32.mrf.mxu0  ;;  %v1080_v19 = vld [vmem:[%s2300_s24 + $0x53] sm:$0xff] }
  0xae   : > { %v1290_v58 = vld [vmem:[%s3333_s3 + $0x58] sm:$0xff] }
  0xaf   : > { %1372 = vmatpush.msrb.mxu2 %v1290_v58 }
  0xb0   : > { %v2619_v63 = vpop.f32.mrf.mxu2  ;;  %v2621_v0 = vpop.f32.mrf.mxu3  ;;  %2176 = vmatmul.msk.f32.gmra.mxu0 %vm306_vm0, %v1077_v60  ;;  %v1437_v60 = vld [vmem:[%s3333_s3 + $0x160] sm:$0xff] }
  0xb1   : > { %1444 = vmatpush.msrb.mxu3 %v1437_v60 }
  0xb3   : > { %1445 = vmatpush.msrb.mxu3 %v1436_v2 }
  0xb5   : > { %2157 = vmatmul.msk.f32.gmra.mxu2 %vm306_vm0, %v2513_v23  ;;  %2167 = vmatmul.msk.f32.gmra.mxu3 %vm306_vm0, %v976_v1  ;;  %v2631_v3 = vpop.f32.mrf.mxu0  ;;  %v2681_v23 = vpop.f32.mrf.mxu1  ;;  %v1289_v1 = vld [vmem:[%s3333_s3 + $0x50] sm:$0xff] }
  0xb6   : > { %1373 = vmatpush.msrb.mxu2 %v1289_v1  ;;  %1446 = vmatpush.msrb.mxu3 %v1435_v5  ;;  %v1518_v1 = vld [vmem:[%s3333_s3 + $0x1d0] sm:$0xff]  ;;  %v1428_v5 = vld [vmem:[%s3333_s3 + $0x118] sm:$0xff] }
  0xb8   : > { %v2640_v7 = vpop.f32.mrf.mxu2  ;;  %v2642_v8 = vpop.f32.mrf.mxu3  ;;  %2177 = vmatmul.msk.f32.gmra.mxu0 %vm306_vm0, %v1078_v4  ;;  %v1288_v4 = vld [vmem:[%s3333_s3 + $0x48] sm:$0xff]  ;;  %1447 = vmatpush.msrb.mxu3 %v1434_v12 }
  0xb9   : > { %1374 = vmatpush.msrb.mxu2 %v1288_v4  ;;  %v1281_v4 = vld [vmem:[%s3333_s3 + $0x10] sm:$0xff]  ;;  %v1280_v12 = vld [vmem:[%s3333_s3 + $0x8] sm:$0xff] }
  0xbd   : > { %2158 = vmatmul.msk.f32.gmra.mxu2 %vm306_vm0, %v2526_v28  ;;  %2168 = vmatmul.msk.f32.gmra.mxu3 %vm306_vm0, %v977_v9  ;;  %v2649_v10 = vpop.f32.mrf.mxu0  ;;  %v2703_v33 = vpop.f32.mrf.mxu1  ;;  %v1309_v9 = vld [vmem:[%s3333_s3 + $0xa0] sm:$0xff] }
  0xc0   : > { %v2658_v14 = vpop.f32.mrf.mxu2  ;;  %v2660_v15 = vpop.f32.mrf.mxu3  ;;  %2178 = vmatmul.msk.f32.gmra.mxu0 %vm306_vm0, %v1079_v11  ;;  %v1287_v11 = vld [vmem:[%s3333_s3 + $0x40] sm:$0xff] }
  0xc1   : > { %1375 = vmatpush.msrb.mxu2 %v1287_v11  ;;  %v1306_v11 = vld [vmem:[%s3333_s3 + $0x88] sm:$0xff] }
  0xc5   : > { %2159 = vmatmul.msk.f32.gmra.mxu2 %vm306_vm0, %v2539_v32  ;;  %2169 = vmatmul.msk.f32.gmra.mxu3 %vm306_vm0, %v978_v17  ;;  %v2670_v18 = vpop.f32.mrf.mxu0  ;;  %v980_v32 = vld [vmem:[%s2300_s24 + $0x62] sm:$0xff]  ;;  %v2736_v46 = vpop.f32.mrf.mxu1  ;;  %v1286_v17 = vld [vmem:[%s3333_s3 + $0x38] sm:$0xff] }
  0xc6   : > { %1376 = vmatpush.msrb.mxu2 %v1286_v17  ;;  %v1516_v17 = vld [vmem:[%s3333_s3 + $0x1c0] sm:$0xff] }
  0xc8   : > { %v2676_v21 = vpop.f32.mrf.mxu2  ;;  %v2678_v22 = vpop.f32.mrf.mxu3  ;;  %2179 = vmatmul.msk.f32.gmra.mxu0 %vm306_vm0, %v1080_v19  ;;  %v1433_v19 = vld [vmem:[%s3333_s3 + $0x140] sm:$0xff]  ;;  %1377 = vmatpush.msrb.mxu2 %v1285_v30  ;;  %v1515_v30 = vld [vmem:[%s3333_s3 + $0x1b8] sm:$0xff] }
  0xc9   : > { %1448 = vmatpush.msrb.mxu3 %v1433_v19 }
  0xcd   : > { %2160 = vmatmul.msk.f32.gmra.mxu2 %vm306_vm0, %v2552_v36  ;;  %2170 = vmatmul.msk.f32.gmra.mxu3 %vm306_vm0, %v979_v24  ;;  %v2690_v26 = vpop.f32.mrf.mxu0  ;;  %v1312_v36 = vld [vmem:[%s3333_s3 + $0xb8] sm:$0xff]  ;;  %v2785_v16 = vpop.f32.mrf.mxu1 }
  0xce   : > { %1329 = vmatpush.msra.mxu1 %v1312_v36  ;;  %v1431_v36 = vld [vmem:[%s3333_s3 + $0x130] sm:$0xff] }
  0xd0   : > { %v2693_v28 = vpop.f32.mrf.mxu2  ;;  %v2695_v29 = vpop.f32.mrf.mxu3  ;;  %2180 = vmatmul.msk.f32.gmra.mxu0 %vm306_vm0, %v1081_v27  ;;  %1330 = vmatpush.msra.mxu1 %v1311_v43  ;;  %v1308_v27 = vld [vmem:[%s3333_s3 + $0x98] sm:$0xff]  ;;  %v1430_v43 = vld [vmem:[%s3333_s3 + $0x128] sm:$0xff] }
  0xd2   : > { %1331 = vmatpush.msra.mxu1 %v1310_v55  ;;  %v2220_v55 = vmov 0.0  }
  0xd3   : > { %262 = vst [vmem:[#allocation2] sm:$0xff] %v2220_v55 }
  0xd4   : > { %1332 = vmatpush.msra.mxu1 %v1309_v9  ;;  %263 = vst [vmem:[#allocation2 + $0x8] sm:$0xff] %v2220_v55  ;;  %v1517_v9 = vld [vmem:[%s3333_s3 + $0x1c8] sm:$0xff] }
  0xd5   : > { %2161 = vmatmul.msk.f32.gmra.mxu2 %vm306_vm0, %v878_v31  ;;  %2171 = vmatmul.msk.f32.gmra.mxu3 %vm306_vm0, %v980_v32  ;;  %v2707_v34 = vpop.f32.mrf.mxu0  ;;  %v1432_v31 = vld [vmem:[%s3333_s3 + $0x138] sm:$0xff]  ;;  %v1521_v32 = vld [vmem:[%s3333_s3 + $0x1e8] sm:$0xff]  ;;  %v2848_v2 = vpop.f32.mrf.mxu1  ;;  %274 = vst [vmem:[#allocation2 + $0x60] sm:$0xff] %v2220_v55 }
  0xd6   : > { %1333 = vmatpush.msra.mxu1 %v1308_v27  ;;  %1449 = vmatpush.msrb.mxu3 %v1432_v31  ;;  %275 = vst [vmem:[#allocation2 + $0x68] sm:$0xff] %v2220_v55  ;;  %v1426_v27 = vld [vmem:[%s3333_s3 + $0x108] sm:$0xff] }
  0xd7   : > { %1526 = vmatpush.msrb.mxu0 %v1521_v32  ;;  %v1425_v32 = vld [vmem:[%s3333_s3 + $0x100] sm:$0xff] }
  0xd8   : > { %v2716_v38 = vpop.f32.mrf.mxu2  ;;  %v2718_v39 = vpop.f32.mrf.mxu3  ;;  %2181 = vmatmul.msk.f32.gmra.mxu0 %vm306_vm0, %v1082_v35  ;;  %v1284_v35 = vld [vmem:[%s3333_s3 + $0x28] sm:$0xff]  ;;  %1450 = vmatpush.msrb.mxu3 %v1431_v36 }
  0xd9   : > { %1378 = vmatpush.msrb.mxu2 %v1284_v35  ;;  %1527 = vmatpush.msrb.mxu0 %v1520_v37  ;;  %v1514_v35 = vld [vmem:[%s3333_s3 + $0x1b0] sm:$0xff] }
  0xda   : > { %1451 = vmatpush.msrb.mxu3 %v1430_v43  ;;  %1334 = vmatpush.msra.mxu1 %v1307_v45  ;;  %v1305_v45 = vld [vmem:[%s3333_s3 + $0x80] sm:$0xff] }
  0xdb   : > { %1379 = vmatpush.msrb.mxu2 %v1283_v41  ;;  %1528 = vmatpush.msrb.mxu0 %v1519_v44  ;;  %v1269_v31 = vld [vmem:[#allocation2 + $0x5] sm:$0xff] }
  0xdc   : > { %1452 = vmatpush.msrb.mxu3 %v1429_v53  ;;  %1335 = vmatpush.msra.mxu1 %v1306_v11  ;;  %v1415_v41 = vld [vmem:[#allocation2 + $0x7] sm:$0xff]  ;;  %v432_v11 = vadd.f32 %v2681_v23, %v2573_v42  ;;  %v1605_v42 = vld [vmem:[%s3333_s3 + $0x270] sm:$0xff] }
  0xdd   : > { %v2738_v48 = vpop.f32.mrf.mxu0  ;;  %1380 = vmatpush.msrb.mxu2 %v1282_v50  ;;  %1529 = vmatpush.msrb.mxu0 %v1518_v1  ;;  %v829_v43 = vpop.f32.mrf.mxu1  ;;  %v1513_v44 = vld [vmem:[%s3333_s3 + $0x1a8] sm:$0xff]  ;;  %v1512_v50 = vld [vmem:[%s3333_s3 + $0x1a0] sm:$0xff]  ;;  %v1511_v1 = vld [vmem:[%s3333_s3 + $0x198] sm:$0xff] }
  0xde   : > { %1453 = vmatpush.msrb.mxu3 %v1428_v5  ;;  %1336 = vmatpush.msra.mxu1 %v1305_v45  ;;  %v1295_v53 = vld [vmem:[#allocation2 + $0x6] sm:$0xff] }
  0xdf   : > { %1381 = vmatpush.msrb.mxu2 %v1281_v4  ;;  %1530 = vmatpush.msrb.mxu0 %v1517_v9  ;;  %v1510_v4 = vld [vmem:[%s3333_s3 + $0x190] sm:$0xff] }
  0xe0   : > { %v2755_v61 = vpop.f32.mrf.mxu2  ;;  %v2757_v62 = vpop.f32.mrf.mxu3  ;;  %1454 = vmatpush.msrb.mxu3 %v1427_v13  ;;  %1337 = vmatmul.f32.vlgmr.msra.gmra.mxu1 %v1295_v53  ;;  %v553_v13 = vadd.f32 %v2658_v14, %v432_v11  ;;  %v438_v11 = vadd.f32 %v2736_v46, %v2598_v54  ;;  %v1602_v54 = vld [vmem:[%s3333_s3 + $0x258] sm:$0xff] }
  0xe1   : > { %1382 = vmatpush.msrb.mxu2 %v1280_v12  ;;  %1531 = vmatpush.msrb.mxu0 %v1516_v17  ;;  %v1509_v12 = vld [vmem:[%s3333_s3 + $0x188] sm:$0xff] }
  0xe2   : > { %1455 = vmatpush.msrb.mxu3 %v1426_v27  ;;  %v655_v14 = vadd.f32 %v2660_v15, %v553_v13 }
  0xe3   : > { %1383 = vmatpush.msrb.mxu2 %v1279_v20  ;;  %1532 = vmatpush.msrb.mxu0 %v1515_v30  ;;  %v1508_v20 = vld [vmem:[%s3333_s3 + $0x180] sm:$0xff]  ;;  %v1606_v30 = vld [vmem:[%s3333_s3 + $0x278] sm:$0xff] }
  0xe4   : > { %1384 = vmatmul.f32.vlgmr.msrb.gmra.mxu2 %v1269_v31  ;;  %1456 = vmatpush.msrb.mxu3 %v1425_v32  ;;  %v435_v32 = vadd.f32 %v2703_v33, %v2586_v49 }
  0xe5   : > { %v2771_v6 = vpop.f32.mrf.mxu0  ;;  %1533 = vmatpush.msrb.mxu0 %v1514_v35  ;;  %1457 = vmatmul.f32.vlgmr.msrb.gmra.mxu3 %v1415_v41  ;;  %v832_v17 = vpop.f32.mrf.mxu1  ;;  %v757_v35 = vadd.f32 %v2649_v10, %v655_v14 }
  0xe6   : > { %1607 = vmatpush.msrb.mxu1 %v1606_v30  ;;  %v554_v41 = vadd.f32 %v2676_v21, %v435_v32  ;;  %v555_v21 = vadd.f32 %v2693_v28, %v438_v11  ;;  %v441_v32 = vadd.f32 %v2785_v16, %v2610_v59  ;;  %v1600_v59 = vld [vmem:[%s3333_s3 + $0x248] sm:$0xff] }
  0xe7   : > { %1534 = vmatpush.msrb.mxu0 %v1513_v44  ;;  %v859_v15 = vadd.f32 %v829_v43, %v757_v35 }
  0xe8   : > { %v2796_v24 = vpop.f32.mrf.mxu2  ;;  %v2798_v25 = vpop.f32.mrf.mxu3  ;;  %1608 = vmatpush.msrb.mxu1 %v1605_v42  ;;  %v656_v53 = vadd.f32 %v2678_v22, %v554_v41  ;;  %v1603_v22 = vld [vmem:[%s3333_s3 + $0x260] sm:$0xff]  ;;  %v657_v28 = vadd.f32 %v2695_v29, %v555_v21 }
  0xe9   : > { %1535 = vmatpush.msrb.mxu0 %v1512_v50  ;;  %v1604_v50 = vld [vmem:[%s3333_s3 + $0x268] sm:$0xff] }
  0xea   : > { %1609 = vmatpush.msrb.mxu1 %v1604_v50  ;;  %v758_v10 = vadd.f32 %v2670_v18, %v656_v53  ;;  %v556_v50 = vadd.f32 %v2716_v38, %v441_v32 }
  0xeb   : > { %1536 = vmatpush.msrb.mxu0 %v1511_v1 }
  0xec   : > { %1610 = vmatpush.msrb.mxu1 %v1603_v22  ;;  %v860_v18 = vadd.f32 %v832_v17, %v758_v10 }
  0xed   : > { %v2821_v40 = vpop.f32.mrf.mxu0  ;;  %1537 = vmatpush.msrb.mxu0 %v1510_v4  ;;  %v835_v44 = vpop.f32.mrf.mxu1 }
  0xee   : > { %1611 = vmatpush.msrb.mxu1 %v1602_v54 }
  0xef   : > { %1538 = vmatpush.msrb.mxu0 %v1509_v12  ;;  %v2950_v12 = vld [vmem:[%s3334_s4] ss:$0 sm:$0xff] }
  0xf0   : > { %v2841_v58 = vpop.f32.mrf.mxu2  ;;  %v2843_v60 = vpop.f32.mrf.mxu3 }
  0xf1   : > { %1539 = vmatpush.msrb.mxu0 %v1508_v20  ;;  %v1202_v20 = vpop.permute.xlu0 %1201 }
  0xf5   : > { %v2871_v19 = vpop.f32.mrf.mxu0  ;;  %v838_v46 = vpop.f32.mrf.mxu1 }
  0xf8   : > { %v2888_v36 = vpop.f32.mrf.mxu2  ;;  %v2890_v37 = vpop.f32.mrf.mxu3 }
  0xfd   : > { %v2901_v55 = vpop.f32.mrf.mxu0  ;;  %v841_v10 = vpop.f32.mrf.mxu1 }
 0x100   : > { %v2909_v5 = vpop.f32.mrf.mxu2  ;;  %v2911_v9 = vpop.f32.mrf.mxu3 }
 0x105   : > { %v2922_v27 = vpop.f32.mrf.mxu0 }
 0x108   : > { %v2931_v23 = vpop.f32.mrf.mxu2  ;;  %v2933_v31 = vpop.f32.mrf.mxu3 }
 0x10d   : > { %v1135_v45 = vpop.f32.mrf.mxu0 }
 0x110   : > { %v931_v1 = vpop.f32.mrf.mxu2  ;;  %v1033_v4 = vpop.f32.mrf.mxu3 }
 0x111   : > { %v961_v49 = vadd.f32 %v931_v1, %v859_v15  ;;  %v1601_v1 = vld [vmem:[%s3333_s3 + $0x250] sm:$0xff] }
 0x112   : > { %1612 = vmatpush.msrb.mxu1 %v1601_v1 }
 0x113   : > { %v1063_v33 = vadd.f32 %v1033_v4, %v961_v49  ;;  %v444_v49 = vadd.f32 %v2848_v2, %v2631_v3  ;;  %v1599_v2 = vld [vmem:[%s3333_s3 + $0x240] sm:$0xff] }
 0x114   : > { %1613 = vmatpush.msrb.mxu1 %v1600_v59 }
 0x115   : > { %v1165_v13 = vadd.f32 %v1135_v45, %v1063_v33  ;;  %v1138_v43 = vpop.f32.mrf.mxu0  ;;  %v759_v45 = vadd.f32 %v2690_v26, %v657_v28  ;;  %v658_v26 = vadd.f32 %v2718_v39, %v556_v50  ;;  %v557_v22 = vadd.f32 %v2755_v61, %v444_v49 }
 0x116   : > { %1614 = vmatpush.msrb.mxu1 %v1599_v2  ;;  %v558_v50 = vadd.f32 %v2796_v24, %v2580_v47  ;;  %v1597_v47 = vld [vmem:[%s3333_s3 + $0x230] sm:$0xff]  ;;  %v1689_v24 = vld [vmem:[%s3333_s3 + $0x2f8] sm:$0xff] }
 0x117   : > { %v1179_v30 = vadd.f32 %v2950_v12, %v1165_v13  ;;  %v861_v16 = vadd.f32 %v835_v44, %v759_v45  ;;  %v1207_v13 = vpop.permute.xlu0 %1206  ;;  %v659_v61 = vadd.f32 %v2757_v62, %v557_v22  ;;  %1690 = vmatpush.msra.mxu2 %v1689_v24 }
 0x118   : > { %v934_v42 = vpop.f32.mrf.mxu2  ;;  %v1036_v14 = vpop.f32.mrf.mxu3 }
 0x119   : > { %v1189_v35 = vmax.f32 %v1179_v30, 0.0  ;;  %v962_v41 = vadd.f32 %v934_v42, %v860_v18  ;;  %v1212_v30 = vpop.permute.xlu1 %1211  ;;  %v761_v45 = vadd.f32 %v2738_v48, %v659_v61  ;;  %v1598_v48 = vld [vmem:[%s3333_s3 + $0x238] sm:$0xff] }
 0x11a   : > { %1615 = vmatpush.msrb.mxu1 %v1598_v48  ;;  %v1767_v48 = vld [vmem:[%s3333_s3 + $0x350] sm:$0xff] }
 0x11b   : > { %v2964_v15 = vmul.f32 %v1202_v20, %v1189_v35  ;;  %v1064_v17 = vadd.f32 %v1036_v14, %v962_v41 }
 0x11c   : > { %1616 = vmatpush.msrb.mxu1 %v1597_v47  ;;  %v1853_v47 = vld [vmem:[%s3333_s3 + $0x3e8] sm:$0xff] }
 0x11d   : > { %1259 = vst [vmem:[#allocation2 + $0x10] sm:$0xff] %v2964_v15  ;;  %v1166_v29 = vadd.f32 %v1138_v43, %v1064_v17  ;;  %v1141_v53 = vpop.f32.mrf.mxu0  ;;  %v760_v43 = vadd.f32 %v2707_v34, %v658_v26  ;;  %v844_v17 = vpop.f32.mrf.mxu1  ;;  %v1772_v26 = vld [vmem:[%s3333_s3 + $0x378] sm:$0xff] }
 0x11e   : > { %1773 = vmatpush.msra.mxu3 %v1772_v26 }
 0x11f   : > { %v1180_v38 = vadd.f32 %v2950_v12, %v1166_v29  ;;  %v862_v34 = vadd.f32 %v838_v46, %v760_v43 }
 0x120   : > { %v937_v4 = vpop.f32.mrf.mxu2  ;;  %v1039_v11 = vpop.f32.mrf.mxu3 }
 0x121   : > { %v1190_v21 = vmax.f32 %v1180_v38, 0.0  ;;  %v963_v33 = vadd.f32 %v937_v4, %v861_v16  ;;  %v863_v38 = vadd.f32 %v841_v10, %v761_v45  ;;  %v660_v4 = vadd.f32 %v2798_v25, %v558_v50  ;;  %v1217_v22 = vpop.permute.xlu1 %1216  ;;  %v1222_v45 = vpop.permute.xlu2 %1221 }
 0x122   : > { %v450_v10 = vadd.f32 %v2591_v52, %v2589_v51 }
 0x123   : > { %v2979_v54 = vmul.f32 %v1207_v13, %v1190_v21  ;;  %v1065_v44 = vadd.f32 %v1039_v11, %v963_v33  ;;  %v1688_v33 = vld [vmem:[%s3333_s3 + $0x2f0] sm:$0xff] }
 0x124   : > { %v1296_v39 = vld [vmem:[#allocation2 + $0xe] sm:$0xff]  ;;  %1691 = vmatpush.msra.mxu2 %v1688_v33 }
 0x125   : > { %v1270_v18 = vld [vmem:[#allocation2 + $0xd] sm:$0xff]  ;;  %1260 = vst [vmem:[#allocation2 + $0x18] sm:$0xff] %v2979_v54  ;;  %v1167_v20 = vadd.f32 %v1141_v53, %v1065_v44  ;;  %1340 = vmatmul.f32.gmra.mxu1 %v1296_v39  ;;  %v1144_v3 = vpop.f32.mrf.mxu0 }
 0x126   : > { %v1416_v28 = vld [vmem:[#allocation2 + $0xf] sm:$0xff]  ;;  %1387 = vmatmul.f32.gmra.mxu2 %v1270_v18  ;;  %v762_v18 = vadd.f32 %v2771_v6, %v660_v4 }
 0x127   : > { %1460 = vmatmul.f32.gmra.mxu3 %v1416_v28  ;;  %1540 = vmatmul.f32.vlgmr.msrb.gmra.mxu0 %v1416_v28  ;;  %v1181_v42 = vadd.f32 %v2950_v12, %v1167_v20  ;;  %v1771_v13 = vld [vmem:[%s3333_s3 + $0x370] sm:$0xff]  ;;  %v1687_v44 = vld [vmem:[%s3333_s3 + $0x2e8] sm:$0xff]  ;;  %v559_v28 = vadd.f32 %v2841_v58, %v450_v10  ;;  %v1686_v58 = vld [vmem:[%s3333_s3 + $0x2e0] sm:$0xff] }
 0x128   : > { %v940_v14 = vpop.f32.mrf.mxu2  ;;  %v1042_v32 = vpop.f32.mrf.mxu3  ;;  %1774 = vmatpush.msra.mxu3 %v1771_v13  ;;  %v1770_v39 = vld [vmem:[%s3333_s3 + $0x368] sm:$0xff]  ;;  %1692 = vmatpush.msra.mxu2 %v1687_v44  ;;  %v1594_v13 = vld [vmem:[%s3333_s3 + $0x218] sm:$0xff]  ;;  %v1682_v10 = vld [vmem:[%s3333_s3 + $0x2c0] sm:$0xff] }
 0x129   : > { %v1191_v35 = vmax.f32 %v1181_v42, 0.0  ;;  %v964_v41 = vadd.f32 %v940_v14, %v862_v34  ;;  %v847_v34 = vpop.f32.mrf.mxu1  ;;  %v1596_v6 = vld [vmem:[%s3333_s3 + $0x228] sm:$0xff]  ;;  %v1769_v42 = vld [vmem:[%s3333_s3 + $0x360] sm:$0xff]  ;;  %v1685_v14 = vld [vmem:[%s3333_s3 + $0x2d8] sm:$0xff] }
 0x12a   : > { %1775 = vmatpush.msra.mxu3 %v1770_v39  ;;  %1617 = vmatpush.msrb.mxu1 %v1596_v6  ;;  %v1766_v33 = vld [vmem:[%s3333_s3 + $0x348] sm:$0xff] }
 0x12b   : > { %v2990_v29 = vmul.f32 %v1212_v30, %v1191_v35  ;;  %v1066_v53 = vadd.f32 %v1042_v32, %v964_v41  ;;  %v1855_v32 = vld [vmem:[%s3333_s3 + $0x3f8] sm:$0xff]  ;;  %v864_v35 = vadd.f32 %v844_v17, %v762_v18  ;;  %v661_v41 = vadd.f32 %v2843_v60, %v559_v28  ;;  %1693 = vmatpush.msra.mxu2 %v1686_v58  ;;  %v1854_v60 = vld [vmem:[%s3333_s3 + $0x3f0] sm:$0xff]  ;;  %v1765_v18 = vld [vmem:[%s3333_s3 + $0x340] sm:$0xff] }
 0x12c   : > { %v1297_v46 = vld [vmem:[#allocation2 + $0x16] sm:$0xff]  ;;  %1776 = vmatpush.msra.mxu3 %v1769_v42  ;;  %1856 = vmatpush.msra.mxu0 %v1855_v32  ;;  %v453_v17 = vadd.f32 %v2603_v57, %v2601_v56  ;;  %v1683_v57 = vld [vmem:[%s3333_s3 + $0x2c8] sm:$0xff] }
 0x12d   : > { %v1271_v1 = vld [vmem:[#allocation2 + $0x15] sm:$0xff]  ;;  %1261 = vst [vmem:[#allocation2 + $0x20] sm:$0xff] %v2990_v29  ;;  %v1168_v59 = vadd.f32 %v1144_v3, %v1066_v53  ;;  %1343 = vmatmul.f32.gmra.mxu1 %v1297_v46  ;;  %v1147_v16 = vpop.f32.mrf.mxu0  ;;  %1694 = vmatpush.msra.mxu2 %v1685_v14  ;;  %v763_v24 = vadd.f32 %v2821_v40, %v661_v41 }
 0x12e   : > { %v1417_v62 = vld [vmem:[#allocation2 + $0x17] sm:$0xff]  ;;  %1390 = vmatmul.f32.gmra.mxu2 %v1271_v1  ;;  %1857 = vmatpush.msra.mxu0 %v1854_v60  ;;  %v560_v26 = vadd.f32 %v2888_v36, %v453_v17  ;;  %v1595_v36 = vld [vmem:[%s3333_s3 + $0x220] sm:$0xff] }
 0x12f   : > { %1463 = vmatmul.f32.gmra.mxu3 %v1417_v62  ;;  %1543 = vmatmul.f32.gmra.mxu0 %v1417_v62  ;;  %v1182_v11 = vadd.f32 %v2950_v12, %v1168_v59  ;;  %v1768_v53 = vld [vmem:[%s3333_s3 + $0x358] sm:$0xff]  ;;  %v1684_v62 = vld [vmem:[%s3333_s3 + $0x2d0] sm:$0xff] }
 0x130   : > { %v943_v49 = vpop.f32.mrf.mxu2  ;;  %v1045_v21 = vpop.f32.mrf.mxu3  ;;  %1777 = vmatpush.msra.mxu3 %v1768_v53  ;;  %1695 = vmatpush.msra.mxu2 %v1684_v62  ;;  %v1851_v28 = vld [vmem:[%s3333_s3 + $0x3d8] sm:$0xff]  ;;  %v1680_v14 = vld [vmem:[%s3333_s3 + $0x2b0] sm:$0xff]  ;;  %v1849_v53 = vld [vmem:[%s3333_s3 + $0x3c8] sm:$0xff] }
 0x131   : > { %v1192_v43 = vmax.f32 %v1182_v11, 0.0  ;;  %v965_v25 = vadd.f32 %v943_v49, %v863_v38  ;;  %1858 = vmatpush.msra.mxu0 %v1853_v47  ;;  %v850_v44 = vpop.f32.mrf.mxu1  ;;  %1618 = vmatpush.msrb.mxu1 %v1595_v36  ;;  %v1592_v62 = vld [vmem:[%s3333_s3 + $0x208] sm:$0xff]  ;;  %v1678_v47 = vld [vmem:[%s3333_s3 + $0x2a0] sm:$0xff] }
 0x132   : > { %1778 = vmatpush.msra.mxu3 %v1767_v48  ;;  %1696 = vmatpush.msra.mxu2 %v1683_v57 }
 0x133   : > { %v3023_v20 = vmul.f32 %v1217_v22, %v1192_v43  ;;  %v1067_v51 = vadd.f32 %v1045_v21, %v965_v25  ;;  %v1852_v43 = vld [vmem:[%s3333_s3 + $0x3e0] sm:$0xff]  ;;  %v865_v25 = vadd.f32 %v847_v34, %v763_v24  ;;  %v662_v22 = vadd.f32 %v2890_v37, %v560_v26  ;;  %v1681_v37 = vld [vmem:[%s3333_s3 + $0x2b8] sm:$0xff]  ;;  %1619 = vmatpush.msrb.mxu1 %v1594_v13 }
 0x134   : > { %v1298_v52 = vld [vmem:[#allocation2 + $0x1e] sm:$0xff]  ;;  %1779 = vmatpush.msra.mxu3 %v1766_v33  ;;  %1859 = vmatpush.msra.mxu0 %v1852_v43  ;;  %v459_v26 = vadd.f32 %v2642_v8, %v2640_v7 }
 0x135   : > { %v1272_v3 = vld [vmem:[#allocation2 + $0x1d] sm:$0xff]  ;;  %1262 = vst [vmem:[#allocation2 + $0x28] sm:$0xff] %v3023_v20  ;;  %v1169_v61 = vadd.f32 %v1147_v16, %v1067_v51  ;;  %1346 = vmatmul.f32.gmra.mxu1 %v1298_v52  ;;  %v1150_v30 = vpop.f32.mrf.mxu0  ;;  %v456_v51 = vadd.f32 %v2621_v0, %v2619_v63  ;;  %1697 = vmatpush.msra.mxu2 %v1682_v10  ;;  %v1850_v63 = vld [vmem:[%s3333_s3 + $0x3d0] sm:$0xff] }
 0x136   : > { %v1418_v2 = vld [vmem:[#allocation2 + $0x1f] sm:$0xff]  ;;  %1393 = vmatmul.f32.gmra.mxu2 %v1272_v3  ;;  %1780 = vmatpush.msra.mxu3 %v1765_v18  ;;  %v764_v6 = vadd.f32 %v2871_v19, %v662_v22  ;;  %v1593_v19 = vld [vmem:[%s3333_s3 + $0x210] sm:$0xff]  ;;  %v562_v7 = vadd.f32 %v2931_v23, %v459_v26 }
 0x137   : > { %1466 = vmatmul.f32.gmra.mxu3 %v1418_v2  ;;  %1546 = vmatmul.f32.gmra.mxu0 %v1418_v2  ;;  %v1183_v50 = vadd.f32 %v2950_v12, %v1169_v61  ;;  %v1764_v61 = vld [vmem:[%s3333_s3 + $0x338] sm:$0xff]  ;;  %v561_v0 = vadd.f32 %v2909_v5, %v456_v51  ;;  %v1591_v24 = vld [vmem:[%s3333_s3 + $0x200] sm:$0xff]  ;;  %v1676_v22 = vld [vmem:[%s3333_s3 + $0x290] sm:$0xff] }
 0x138   : > { %v946_v46 = vpop.f32.mrf.mxu2  ;;  %v1048_v1 = vpop.f32.mrf.mxu3  ;;  %1860 = vmatpush.msra.mxu0 %v1851_v28  ;;  %1698 = vmatpush.msra.mxu2 %v1681_v37  ;;  %v866_v60 = vadd.f32 %v850_v44, %v764_v6  ;;  %v1677_v33 = vld [vmem:[%s3333_s3 + $0x298] sm:$0xff]  ;;  %v1759_v44 = vld [vmem:[%s3333_s3 + $0x310] sm:$0xff]  ;;  %v664_v28 = vadd.f32 %v2933_v31, %v562_v7  ;;  %v1675_v31 = vld [vmem:[%s3333_s3 + $0x288] sm:$0xff] }
 0x139   : > { %v1193_v59 = vmax.f32 %v1183_v50, 0.0  ;;  %v966_v16 = vadd.f32 %v946_v46, %v864_v35  ;;  %1781 = vmatpush.msra.mxu3 %v1764_v61  ;;  %v1763_v50 = vld [vmem:[%s3333_s3 + $0x330] sm:$0xff]  ;;  %v663_v46 = vadd.f32 %v2911_v9, %v561_v0  ;;  %1620 = vmatpush.msrb.mxu1 %v1593_v19  ;;  %v1848_v9 = vld [vmem:[%s3333_s3 + $0x3c0] sm:$0xff]  ;;  %v1760_v13 = vld [vmem:[%s3333_s3 + $0x318] sm:$0xff]  ;;  %v1237_v6 = vpop.permute.xlu1 %1236 }
 0x13a   : > { %1861 = vmatpush.msra.mxu0 %v1850_v63  ;;  %1699 = vmatpush.msra.mxu2 %v1680_v14  ;;  %v1937_v37 = vld [vmem:[%s3333_s3 + $0x470] sm:$0xff]  ;;  %v1758_v61 = vld [vmem:[%s3333_s3 + $0x308] sm:$0xff]  ;;  %v1934_v7 = vld [vmem:[%s3333_s3 + $0x458] sm:$0xff] }
 0x13b   : > { %v3062_v38 = vmul.f32 %v1222_v45, %v1193_v59  ;;  %v1068_v56 = vadd.f32 %v1048_v1, %v966_v16  ;;  %v1679_v1 = vld [vmem:[%s3333_s3 + $0x2a8] sm:$0xff]  ;;  %1782 = vmatpush.msra.mxu3 %v1763_v50  ;;  %1621 = vmatpush.msrb.mxu1 %v1592_v62 }
 0x13c   : > { %v1299_v4 = vld [vmem:[#allocation2 + $0x26] sm:$0xff]  ;;  %1862 = vmatpush.msra.mxu0 %v1849_v53  ;;  %1700 = vmatpush.msra.mxu2 %v1679_v1  ;;  %v1843_v53 = vld [vmem:[%s3333_s3 + $0x398] sm:$0xff] }
 0x13d   : > { %v1273_v11 = vld [vmem:[#allocation2 + $0x25] sm:$0xff]  ;;  %1263 = vst [vmem:[#allocation2 + $0x30] sm:$0xff] %v3062_v38  ;;  %v1170_v21 = vadd.f32 %v1150_v30, %v1068_v56  ;;  %1349 = vmatmul.f32.gmra.mxu1 %v1299_v4  ;;  %v1153_v40 = vpop.f32.mrf.mxu0  ;;  %v1227_v30 = vpop.permute.xlu2 %1226 }
 0x13e   : > { %v1419_v49 = vld [vmem:[#allocation2 + $0x27] sm:$0xff]  ;;  %1396 = vmatmul.f32.gmra.mxu2 %v1273_v11  ;;  %v1847_v11 = vld [vmem:[%s3333_s3 + $0x3b8] sm:$0xff]  ;;  %1863 = vmatpush.msra.mxu0 %v1848_v9 }
 0x13f   : > { %1469 = vmatmul.f32.gmra.mxu3 %v1419_v49  ;;  %1549 = vmatmul.f32.gmra.mxu0 %v1419_v49  ;;  %v1184_v39 = vadd.f32 %v2950_v12, %v1170_v21  ;;  %v1762_v59 = vld [vmem:[%s3333_s3 + $0x328] sm:$0xff]  ;;  %v1761_v4 = vld [vmem:[%s3333_s3 + $0x320] sm:$0xff]  ;;  %v765_v49 = vadd.f32 %v2901_v55, %v663_v46  ;;  %v853_v21 = vpop.f32.mrf.mxu1 }
 0x140   : > { %v949_v52 = vpop.f32.mrf.mxu2  ;;  %v1051_v3 = vpop.f32.mrf.mxu3  ;;  %1783 = vmatpush.msra.mxu3 %v1762_v59  ;;  %1701 = vmatpush.msra.mxu2 %v1678_v47  ;;  %v1936_v46 = vld [vmem:[%s3333_s3 + $0x468] sm:$0xff] }
 0x141   : > { %v1194_v2 = vmax.f32 %v1184_v39, 0.0  ;;  %v967_v34 = vadd.f32 %v949_v52, %v865_v25  ;;  %1622 = vmatpush.msrb.mxu1 %v1591_v24  ;;  %1864 = vmatpush.msra.mxu0 %v1847_v11  ;;  %v1846_v25 = vld [vmem:[%s3333_s3 + $0x3b0] sm:$0xff]  ;;  %v1938_v39 = vld [vmem:[%s3333_s3 + $0x478] sm:$0xff]  ;;  %v867_v18 = vadd.f32 %v853_v21, %v765_v49  ;;  %v1841_v47 = vld [vmem:[%s3333_s3 + $0x388] sm:$0xff] }
 0x142   : > { %1784 = vmatpush.msra.mxu3 %v1761_v4  ;;  %1702 = vmatpush.msra.mxu2 %v1677_v33  ;;  %v1840_v4 = vld [vmem:[%s3333_s3 + $0x380] sm:$0xff] }
 0x143   : > { %v3104_v58 = vmul.f32 %v1227_v30, %v1194_v2  ;;  %v1069_v42 = vadd.f32 %v1051_v3, %v967_v34  ;;  %v1845_v3 = vld [vmem:[%s3333_s3 + $0x3a8] sm:$0xff]  ;;  %1865 = vmatpush.msra.mxu0 %v1846_v25  ;;  %1939 = vmatpush.msra.mxu1 %v1938_v39  ;;  %v1844_v30 = vld [vmem:[%s3333_s3 + $0x3a0] sm:$0xff]  ;;  %v1933_v25 = vld [vmem:[%s3333_s3 + $0x450] sm:$0xff] }
 0x144   : > { %v1300_v32 = vld [vmem:[#allocation2 + $0x2e] sm:$0xff]  ;;  %1785 = vmatpush.msra.mxu3 %v1760_v13  ;;  %1703 = vmatpush.msra.mxu2 %v1676_v22  ;;  %v1747_v39 = vld [vmem:[#allocation2 + $0x19] sm:$0xff] }
 0x145   : > { %v1274_v35 = vld [vmem:[#allocation2 + $0x2d] sm:$0xff]  ;;  %1264 = vst [vmem:[#allocation2 + $0x38] sm:$0xff] %v3104_v58  ;;  %v1171_v5 = vadd.f32 %v1153_v40, %v1069_v42  ;;  %1352 = vmatmul.f32.gmra.mxu1 %v1300_v32  ;;  %v1156_v45 = vpop.f32.mrf.mxu0  ;;  %v1232_v40 = vpop.permute.xlu0 %1231  ;;  %1866 = vmatpush.msra.mxu0 %v1845_v3  ;;  %v766_v42 = vadd.f32 %v2922_v27, %v664_v28  ;;  %v1748_v28 = vld [vmem:[#allocation2 + $0x21] sm:$0xff] }
 0x146   : > { %v1420_v41 = vld [vmem:[#allocation2 + $0x2f] sm:$0xff]  ;;  %1399 = vmatmul.f32.gmra.mxu2 %v1274_v35  ;;  %1786 = vmatpush.msra.mxu3 %v1759_v44  ;;  %v1674_v35 = vld [vmem:[%s3333_s3 + $0x280] sm:$0xff]  ;;  %v1242_v24 = vpop.permute.xlu2 %1241 }
 0x147   : > { %1472 = vmatmul.f32.gmra.mxu3 %v1420_v41  ;;  %1552 = vmatmul.f32.gmra.mxu0 %v1420_v41  ;;  %v1185_v17 = vadd.f32 %v2950_v12, %v1171_v5  ;;  %v1757_v41 = vld [vmem:[%s3333_s3 + $0x300] sm:$0xff]  ;;  %v856_v5 = vpop.f32.mrf.mxu1  ;;  %v1664_v44 = vld [vmem:[#allocation2 + $0x11] sm:$0xff] }
 0x148   : > { %v952_v16 = vpop.f32.mrf.mxu2  ;;  %v1054_v48 = vpop.f32.mrf.mxu3  ;;  %1940 = vmatpush.msra.mxu1 %v1937_v37  ;;  %1704 = vmatpush.msra.mxu2 %v1675_v31  ;;  %v868_v1 = vadd.f32 %v856_v5, %v766_v42  ;;  %v1924_v5 = vld [vmem:[%s3333_s3 + $0x408] sm:$0xff] }
 0x149   : > { %v1195_v56 = vmax.f32 %v1185_v17, 0.0  ;;  %v968_v57 = vadd.f32 %v952_v16, %v866_v60  ;;  %1787 = vmatpush.msra.mxu3 %v1758_v61  ;;  %1867 = vmatpush.msra.mxu0 %v1844_v30  ;;  %v1842_v60 = vld [vmem:[%s3333_s3 + $0x390] sm:$0xff]  ;;  %v1935_v17 = vld [vmem:[%s3333_s3 + $0x460] sm:$0xff] }
 0x14a   : > { %1705 = vmatpush.msra.mxu2 %v1674_v35  ;;  %1941 = vmatpush.msra.mxu1 %v1936_v46  ;;  %v1832_v30 = vld [vmem:[#allocation2 + $0x2a] sm:$0xff] }
 0x14b   : > { %v3149_v8 = vmul.f32 %v1232_v40, %v1195_v56  ;;  %v1070_v36 = vadd.f32 %v1054_v48, %v968_v57  ;;  %1788 = vmatpush.msra.mxu3 %v1757_v41  ;;  %1868 = vmatpush.msra.mxu0 %v1843_v53 }
 0x14c   : > { %v1301_v55 = vld [vmem:[#allocation2 + $0x36] sm:$0xff]  ;;  %1942 = vmatpush.msra.mxu1 %v1935_v17 }
 0x14d   : > { %v1275_v10 = vld [vmem:[#allocation2 + $0x35] sm:$0xff]  ;;  %1265 = vst [vmem:[#allocation2 + $0x40] sm:$0xff] %v3149_v8  ;;  %v1172_v23 = vadd.f32 %v1156_v45, %v1070_v36  ;;  %1355 = vmatmul.f32.gmra.mxu1 %v1301_v55  ;;  %v1159_v52 = vpop.f32.mrf.mxu0  ;;  %1869 = vmatpush.msra.mxu0 %v1842_v60  ;;  %v1247_v13 = vpop.permute.xlu0 %1246 }
 0x14e   : > { %v1421_v43 = vld [vmem:[#allocation2 + $0x37] sm:$0xff]  ;;  %1402 = vmatmul.f32.gmra.mxu2 %v1275_v10  ;;  %1943 = vmatpush.msra.mxu1 %v1934_v7 }
 0x14f   : > { %1475 = vmatmul.f32.gmra.mxu3 %v1421_v43  ;;  %1555 = vmatmul.f32.gmra.mxu0 %v1421_v43  ;;  %v1186_v51 = vadd.f32 %v2950_v12, %v1172_v23 }
 0x150   : > { %v955_v2 = vpop.f32.mrf.mxu2  ;;  %v1057_v34 = vpop.f32.mrf.mxu3  ;;  %1870 = vmatpush.msra.mxu0 %v1841_v47  ;;  %1944 = vmatpush.msra.mxu1 %v1933_v25 }
 0x151   : > { %v1196_v63 = vmax.f32 %v1186_v51, 0.0  ;;  %v969_v0 = vadd.f32 %v955_v2, %v867_v18  ;;  %v1931_v18 = vld [vmem:[%s3333_s3 + $0x440] sm:$0xff] }
 0x152   : > { %1871 = vmatpush.msra.mxu0 %v1840_v4  ;;  %v1830_v51 = vld [vmem:[#allocation2 + $0x1a] sm:$0xff] }
 0x153   : > { %v3188_v14 = vmul.f32 %v1237_v6, %v1196_v63  ;;  %v1071_v32 = vadd.f32 %v1057_v34, %v969_v0  ;;  %v1831_v34 = vld [vmem:[#allocation2 + $0x22] sm:$0xff]  ;;  %v1926_v6 = vld [vmem:[%s3333_s3 + $0x418] sm:$0xff] }
 0x154   : > { %v1302_v45 = vld [vmem:[#allocation2 + $0x3e] sm:$0xff]  ;;  %v1928_v63 = vld [vmem:[%s3333_s3 + $0x428] sm:$0xff] }
 0x155   : > { %v1276_v19 = vld [vmem:[#allocation2 + $0x3d] sm:$0xff]  ;;  %1266 = vst [vmem:[#allocation2 + $0x48] sm:$0xff] %v3188_v14  ;;  %v1173_v27 = vadd.f32 %v1159_v52, %v1071_v32  ;;  %1358 = vmatmul.f32.gmra.mxu1 %v1302_v45  ;;  %v1162_v26 = vpop.f32.mrf.mxu0  ;;  %v1929_v52 = vld [vmem:[%s3333_s3 + $0x430] sm:$0xff] }
 0x156   : > { %v1422_v50 = vld [vmem:[#allocation2 + $0x3f] sm:$0xff]  ;;  %1405 = vmatmul.f32.gmra.mxu2 %v1276_v19  ;;  %v1833_v32 = vld [vmem:[#allocation2 + $0x32] sm:$0xff] }
 0x157   : > { %1478 = vmatmul.f32.gmra.mxu3 %v1422_v50  ;;  %1558 = vmatmul.f32.gmra.mxu0 %v1422_v50  ;;  %v1187_v62 = vadd.f32 %v2950_v12, %v1173_v27  ;;  %v1927_v0 = vld [vmem:[%s3333_s3 + $0x420] sm:$0xff] }
 0x158   : > { %v958_v59 = vpop.f32.mrf.mxu2  ;;  %v1060_v9 = vpop.f32.mrf.mxu3  ;;  %v1751_v42 = vld [vmem:[#allocation2 + $0x39] sm:$0xff] }
 0x159   : > { %v1197_v16 = vmax.f32 %v1187_v62, 0.0  ;;  %v970_v48 = vadd.f32 %v958_v59, %v868_v1  ;;  %v1834_v41 = vld [vmem:[#allocation2 + $0x3a] sm:$0xff] }
 0x15b   : > { %v3213_v56 = vmul.f32 %v1242_v24, %v1197_v16  ;;  %v1072_v57 = vadd.f32 %v1060_v9, %v970_v48 }
 0x15c   : > { %v1303_v11 = vld [vmem:[#allocation2 + $0x46] sm:$0xff] }
 0x15d   : > { %v1277_v49 = vld [vmem:[#allocation2 + $0x45] sm:$0xff]  ;;  %1267 = vst [vmem:[#allocation2 + $0x50] sm:$0xff] %v3213_v56  ;;  %v1174_v40 = vadd.f32 %v1162_v26, %v1072_v57  ;;  %1361 = vmatmul.f32.gmra.mxu1 %v1303_v11  ;;  %v1338_v3 = vpop.f32.mrf.mxu1 }
 0x15e   : > { %v1423_v21 = vld [vmem:[#allocation2 + $0x47] sm:$0xff]  ;;  %1408 = vmatmul.f32.gmra.mxu2 %v1277_v49 }
 0x15f   : > { %1481 = vmatmul.f32.gmra.mxu3 %v1423_v21  ;;  %1561 = vmatmul.f32.gmra.mxu0 %v1423_v21  ;;  %v1188_v36 = vadd.f32 %v2950_v12, %v1174_v40  ;;  %v1932_v12 = vld [vmem:[%s3333_s3 + $0x448] sm:$0xff] }
 0x160   : > { %1945 = vmatpush.msra.mxu1 %v1932_v12  ;;  %v1752_v35 = vld [vmem:[#allocation2 + $0x41] sm:$0xff] }
 0x161   : > { %v1198_v33 = vmax.f32 %v1188_v36, 0.0  ;;  %v1756_v11 = vld [vmem:[#allocation2 + $0x61] sm:$0xff] }
 0x162   : > { %1946 = vmatpush.msra.mxu1 %v1931_v18  ;;  %v1914_v18 = vld [vmem:[#allocation2 + $0x23] sm:$0xff] }
 0x163   : > { %v3223_v55 = vmul.f32 %v1247_v13, %v1198_v33 }
 0x164   : > { %v1304_v10 = vld [vmem:[#allocation2 + $0x4e] sm:$0xff] }
 0x165   : > { %v1278_v43 = vld [vmem:[#allocation2 + $0x4d] sm:$0xff]  ;;  %1268 = vst [vmem:[#allocation2 + $0x58] sm:$0xff] %v3223_v55  ;;  %1364 = vmatmul.f32.gmra.mxu1 %v1304_v10  ;;  %v1839_v10 = vld [vmem:[#allocation2 + $0x62] sm:$0xff] }
 0x166   : > { %v1424_v23 = vld [vmem:[#allocation2 + $0x4f] sm:$0xff]  ;;  %1411 = vmatmul.f32.gmra.mxu2 %v1278_v43  ;;  %v1913_v43 = vld [vmem:[#allocation2 + $0x1b] sm:$0xff] }
 0x167   : > { %1484 = vmatmul.f32.gmra.mxu3 %v1424_v23  ;;  %1564 = vmatmul.f32.gmra.mxu0 %v1424_v23  ;;  %v1385_v37 = vpop.f32.mrf.mxu2  ;;  %v1753_v45 = vld [vmem:[#allocation2 + $0x49] sm:$0xff] }
 0x168   : > { %v1386_v2 = vadd.f32 %v1385_v37, %v1338_v3  ;;  %v1458_v31 = vpop.f32.mrf.mxu3  ;;  %v1836_v46 = vld [vmem:[#allocation2 + $0x4a] sm:$0xff] }
 0x16a   : > { %v1488_v61 = vadd.f32 %v1458_v31, %v1386_v2 }
 0x16c   : > { %v1507_v22 = vld [vmem:[#allocation2 + $0x57] sm:$0xff] }
 0x16d   : > { %1623 = vmatmul.f32.vlgmr.msrb.gmra.mxu1 %v2964_v15  ;;  %v1930_v15 = vld [vmem:[%s3333_s3 + $0x438] sm:$0xff] }
 0x16e   : > { %1706 = vmatmul.f32.vlgmr.msra.gmra.mxu2 %v1664_v44  ;;  %1947 = vmatpush.msra.mxu1 %v1930_v15  ;;  %v1754_v53 = vld [vmem:[#allocation2 + $0x51] sm:$0xff]  ;;  %v1755_v16 = vld [vmem:[#allocation2 + $0x59] sm:$0xff] }
 0x16f   : > { %1567 = vmatmul.f32.gmra.mxu0 %v1507_v22  ;;  %1789 = vmatmul.f32.vlgmr.msra.gmra.mxu3 %v1747_v39  ;;  %v1837_v48 = vld [vmem:[#allocation2 + $0x52] sm:$0xff]  ;;  %v1838_v21 = vld [vmem:[#allocation2 + $0x5a] sm:$0xff] }
 0x170   : > { %1948 = vmatpush.msra.mxu1 %v1929_v52 }
 0x172   : > { %1949 = vmatpush.msra.mxu1 %v1928_v63 }
 0x174   : > { %1950 = vmatpush.msra.mxu1 %v1927_v0 }
 0x175   : > { %1626 = vmatmul.f32.gmra.mxu1 %v2979_v54  ;;  %v1749_v54 = vld [vmem:[#allocation2 + $0x29] sm:$0xff] }
 0x176   : > { %1709 = vmatmul.f32.gmra.mxu2 %v1747_v39  ;;  %1951 = vmatpush.msra.mxu1 %v1926_v6  ;;  %v1916_v6 = vld [vmem:[#allocation2 + $0x33] sm:$0xff] }
 0x177   : > { %1792 = vmatmul.f32.gmra.mxu3 %v1748_v28  ;;  %1872 = vmatmul.f32.vlgmr.msra.gmra.mxu0 %v1830_v51 }
 0x17d   : > { %1629 = vmatmul.f32.gmra.mxu1 %v2990_v29  ;;  %v1750_v29 = vld [vmem:[#allocation2 + $0x31] sm:$0xff] }
 0x17e   : > { %1712 = vmatmul.f32.gmra.mxu2 %v1748_v28 }
 0x17f   : > { %1795 = vmatmul.f32.gmra.mxu3 %v1749_v54  ;;  %1875 = vmatmul.f32.gmra.mxu0 %v1831_v34 }
 0x185   : > { %1632 = vmatmul.f32.gmra.mxu1 %v3023_v20  ;;  %v1925_v20 = vld [vmem:[%s3333_s3 + $0x410] sm:$0xff] }
 0x186   : > { %1715 = vmatmul.f32.gmra.mxu2 %v1749_v54  ;;  %1952 = vmatpush.msra.mxu1 %v1925_v20  ;;  %v1915_v54 = vld [vmem:[#allocation2 + $0x2b] sm:$0xff] }
 0x187   : > { %1798 = vmatmul.f32.gmra.mxu3 %v1750_v29  ;;  %1878 = vmatmul.f32.gmra.mxu0 %v1832_v30 }
 0x188   : > { %1953 = vmatpush.msra.mxu1 %v1924_v5 }
 0x18d   : > { %1635 = vmatmul.f32.gmra.mxu1 %v3062_v38  ;;  %v1923_v38 = vld [vmem:[%s3333_s3 + $0x400] sm:$0xff] }
 0x18e   : > { %1718 = vmatmul.f32.gmra.mxu2 %v1750_v29  ;;  %1954 = vmatpush.msra.mxu1 %v1923_v38 }
 0x18f   : > { %1801 = vmatmul.f32.gmra.mxu3 %v1751_v42  ;;  %1881 = vmatmul.f32.gmra.mxu0 %v1833_v32 }
 0x195   : > { %1638 = vmatmul.f32.gmra.mxu1 %v3104_v58  ;;  %v1835_v58 = vld [vmem:[#allocation2 + $0x42] sm:$0xff] }
 0x196   : > { %1721 = vmatmul.f32.gmra.mxu2 %v1751_v42 }
 0x197   : > { %1804 = vmatmul.f32.gmra.mxu3 %v1752_v35  ;;  %1884 = vmatmul.f32.gmra.mxu0 %v1834_v41 }
 0x19d   : > { %1641 = vmatmul.f32.gmra.mxu1 %v3149_v8 }
 0x19e   : > { %1724 = vmatmul.f32.gmra.mxu2 %v1752_v35 }
 0x19f   : > { %1807 = vmatmul.f32.gmra.mxu3 %v1753_v45  ;;  %1887 = vmatmul.f32.gmra.mxu0 %v1835_v58 }
 0x1a2   : > { %v1341_v19 = vpop.f32.mrf.mxu1 }
 0x1a4   : > { %v1541_v50 = vpop.f32.mrf.mxu0 }
 0x1a5   : > { %v3266_v27 = vadd.f32 %v1541_v50, %v1488_v61  ;;  %1644 = vmatmul.f32.gmra.mxu1 %v3188_v14 }
 0x1a6   : > { %1727 = vmatmul.f32.gmra.mxu2 %v1753_v45  ;;  %v1917_v45 = vld [vmem:[#allocation2 + $0x3b] sm:$0xff] }
 0x1a7   : > { %1810 = vmatmul.f32.gmra.mxu3 %v1754_v53  ;;  %1890 = vmatmul.f32.gmra.mxu0 %v1836_v46 }
 0x1a9   : > { %v1388_v1 = vpop.f32.mrf.mxu2 }
 0x1aa   : > { %v1389_v62 = vadd.f32 %v1388_v1, %v1341_v19  ;;  %v1461_v60 = vpop.f32.mrf.mxu3  ;;  %v1344_v8 = vpop.f32.mrf.mxu1 }
 0x1ac   : > { %v1489_v17 = vadd.f32 %v1461_v60, %v1389_v62  ;;  %v1544_v59 = vpop.f32.mrf.mxu0  ;;  %v1918_v60 = vld [vmem:[#allocation2 + $0x43] sm:$0xff] }
 0x1ad   : > { %1647 = vmatmul.f32.gmra.mxu1 %v3213_v56 }
 0x1ae   : > { %v3269_v9 = vadd.f32 %v1544_v59, %v1489_v17  ;;  %1730 = vmatmul.f32.gmra.mxu2 %v1754_v53 }
 0x1af   : > { %1813 = vmatmul.f32.gmra.mxu3 %v1755_v16  ;;  %1893 = vmatmul.f32.gmra.mxu0 %v1837_v48 }
 0x1b1   : > { %v1391_v14 = vpop.f32.mrf.mxu2 }
 0x1b2   : > { %v1392_v47 = vadd.f32 %v1391_v14, %v1344_v8  ;;  %v1464_v24 = vpop.f32.mrf.mxu3  ;;  %v1347_v26 = vpop.f32.mrf.mxu1 }
 0x1b4   : > { %v1490_v57 = vadd.f32 %v1464_v24, %v1392_v47  ;;  %v1547_v4 = vpop.f32.mrf.mxu0 }
 0x1b5   : > { %1650 = vmatmul.f32.gmra.mxu1 %v3223_v55 }
 0x1b6   : > { %v3272_v49 = vadd.f32 %v1547_v4, %v1490_v57  ;;  %1733 = vmatmul.f32.gmra.mxu2 %v1755_v16 }
 0x1b7   : > { %1896 = vmatmul.f32.gmra.mxu0 %v1838_v21  ;;  %1816 = vmatmul.f32.gmra.mxu3 %v1756_v11  ;;  %v1920_v21 = vld [vmem:[#allocation2 + $0x53] sm:$0xff] }
 0x1b9   : > { %v1394_v56 = vpop.f32.mrf.mxu2 }
 0x1ba   : > { %v1395_v40 = vadd.f32 %v1394_v56, %v1347_v26  ;;  %v1467_v7 = vpop.f32.mrf.mxu3  ;;  %v1350_v36 = vpop.f32.mrf.mxu1  ;;  %v1919_v26 = vld [vmem:[#allocation2 + $0x4b] sm:$0xff] }
 0x1bc   : > { %v1491_v33 = vadd.f32 %v1467_v7, %v1395_v40  ;;  %v1550_v13 = vpop.f32.mrf.mxu0  ;;  %v1921_v7 = vld [vmem:[#allocation2 + $0x5b] sm:$0xff] }
 0x1bd   : > { %1955 = vmatmul.f32.vlgmr.msra.gmra.mxu1 %v1913_v43 }
 0x1be   : > { %v3275_v23 = vadd.f32 %v1550_v13, %v1491_v33  ;;  %v1922_v33 = vld [vmem:[#allocation2 + $0x63] sm:$0xff] }
 0x1bf   : > { %1899 = vmatmul.f32.gmra.mxu0 %v1839_v10 }
 0x1c1   : > { %v1397_v25 = vpop.f32.mrf.mxu2 }
 0x1c2   : > { %v1398_v12 = vadd.f32 %v1397_v25, %v1350_v36  ;;  %v1470_v22 = vpop.f32.mrf.mxu3  ;;  %v1353_v55 = vpop.f32.mrf.mxu1 }
 0x1c4   : > { %v1492_v44 = vadd.f32 %v1470_v22, %v1398_v12  ;;  %v1553_v39 = vpop.f32.mrf.mxu0 }
 0x1c5   : > { %1958 = vmatmul.f32.gmra.mxu1 %v1914_v18 }
 0x1c6   : > { %v1575_v28 = vadd.f32 %v1553_v39, %v1492_v44 }
 0x1c9   : > { %v1400_v51 = vpop.f32.mrf.mxu2 }
 0x1ca   : > { %v1401_v15 = vadd.f32 %v1400_v51, %v1353_v55  ;;  %v1473_v52 = vpop.f32.mrf.mxu3  ;;  %v1356_v3 = vpop.f32.mrf.mxu1 }
 0x1cc   : > { %v1493_v37 = vadd.f32 %v1473_v52, %v1401_v15  ;;  %v1556_v2 = vpop.f32.mrf.mxu0 }
 0x1cd   : > { %1961 = vmatmul.f32.gmra.mxu1 %v1915_v54 }
 0x1ce   : > { %v1576_v34 = vadd.f32 %v1556_v2, %v1493_v37 }
 0x1d1   : > { %v1403_v31 = vpop.f32.mrf.mxu2 }
 0x1d2   : > { %v1404_v61 = vadd.f32 %v1403_v31, %v1356_v3  ;;  %v1476_v63 = vpop.f32.mrf.mxu3  ;;  %v1359_v0 = vpop.f32.mrf.mxu1 }
 0x1d4   : > { %v1494_v29 = vadd.f32 %v1476_v63, %v1404_v61  ;;  %v1559_v30 = vpop.f32.mrf.mxu0 }
 0x1d5   : > { %1964 = vmatmul.f32.gmra.mxu1 %v1916_v6 }
 0x1d6   : > { %v1577_v42 = vadd.f32 %v1559_v30, %v1494_v29 }
 0x1d9   : > { %v1406_v32 = vpop.f32.mrf.mxu2 }
 0x1da   : > { %v1407_v20 = vadd.f32 %v1406_v32, %v1359_v0  ;;  %v1479_v35 = vpop.f32.mrf.mxu3  ;;  %v1362_v41 = vpop.f32.mrf.mxu1  ;;  %v3294_v0 = vld [vmem:[%s3335_s5] ss:$0 sm:$0xff] }
 0x1dc   : > { %v1495_v5 = vadd.f32 %v1479_v35, %v1407_v20  ;;  %v1562_v38 = vpop.f32.mrf.mxu0 }
 0x1dd   : > { %1967 = vmatmul.f32.gmra.mxu1 %v1917_v45 }
 0x1de   : > { %v1578_v58 = vadd.f32 %v1562_v38, %v1495_v5 }
 0x1e1   : > { %v1409_v19 = vpop.f32.mrf.mxu2 }
 0x1e2   : > { %v1410_v50 = vadd.f32 %v1409_v19, %v1362_v41  ;;  %v1482_v53 = vpop.f32.mrf.mxu3  ;;  %v1365_v46 = vpop.f32.mrf.mxu1 }
 0x1e4   : > { %v1496_v1 = vadd.f32 %v1482_v53, %v1410_v50  ;;  %v1565_v62 = vpop.f32.mrf.mxu0 }
 0x1e5   : > { %1970 = vmatmul.f32.gmra.mxu1 %v1918_v60 }
 0x1e6   : > { %v1579_v8 = vadd.f32 %v1565_v62, %v1496_v1 }
 0x1e9   : > { %v1412_v17 = vpop.f32.mrf.mxu2 }
 0x1ea   : > { %v1413_v59 = vadd.f32 %v1412_v17, %v1365_v46  ;;  %v1485_v16 = vpop.f32.mrf.mxu3  ;;  %v1624_v48 = vpop.f32.mrf.mxu1 }
 0x1eb   : > { %v1654_v47 = vadd.f32 %v1624_v48, %v3266_v27 }
 0x1ec   : > { %v1497_v14 = vadd.f32 %v1485_v16, %v1413_v59  ;;  %v1568_v24 = vpop.f32.mrf.mxu0 }
 0x1ed   : > { %1973 = vmatmul.f32.gmra.mxu1 %v1919_v26 }
 0x1ee   : > { %v1580_v57 = vadd.f32 %v1568_v24, %v1497_v14 }
 0x1f2   : > { %v1627_v4 = vpop.f32.mrf.mxu1  ;;  %v1790_v55 = vpop.f32.mrf.mxu3 }
 0x1f3   : > { %v1655_v11 = vadd.f32 %v1627_v4, %v3269_v9  ;;  %v1707_v9 = vpop.f32.mrf.mxu2 }
 0x1f4   : > { %v1737_v3 = vadd.f32 %v1707_v9, %v1654_v47 }
 0x1f5   : > { %1976 = vmatmul.f32.gmra.mxu1 %v1920_v21 }
 0x1f6   : > { %v1820_v54 = vadd.f32 %v1790_v55, %v1737_v3 }
 0x1fa   : > { %v1630_v56 = vpop.f32.mrf.mxu1 }
 0x1fb   : > { %v1656_v40 = vadd.f32 %v1630_v56, %v3272_v49  ;;  %v1873_v49 = vpop.f32.mrf.mxu0  ;;  %v1710_v18 = vpop.f32.mrf.mxu2 }
 0x1fc   : > { %v1903_v31 = vadd.f32 %v1873_v49, %v1820_v54  ;;  %v1738_v61 = vadd.f32 %v1710_v18, %v1655_v11 }
 0x1fd   : > { %1979 = vmatmul.f32.gmra.mxu1 %v1921_v7 }
 0x202   : > { %v1633_v36 = vpop.f32.mrf.mxu1 }
 0x203   : > { %v1657_v13 = vadd.f32 %v1633_v36, %v3275_v23  ;;  %v1793_v23 = vpop.f32.mrf.mxu3  ;;  %v1876_v52 = vpop.f32.mrf.mxu0 }
 0x205   : > { %1982 = vmatmul.f32.gmra.mxu1 %v1922_v33 }
 0x20a   : > { %v1636_v27 = vpop.f32.mrf.mxu1 }
 0x20b   : > { %v1658_v10 = vadd.f32 %v1636_v27, %v1575_v28  ;;  %v1713_v28 = vpop.f32.mrf.mxu2  ;;  %v1879_v63 = vpop.f32.mrf.mxu0 }
 0x20c   : > { %v1739_v5 = vadd.f32 %v1713_v28, %v1656_v40 }
 0x212   : > { %v1639_v43 = vpop.f32.mrf.mxu1 }
 0x213   : > { %v3281_v25 = vadd.f32 %v1639_v43, %v1576_v34  ;;  %v1796_v34 = vpop.f32.mrf.mxu3  ;;  %v1716_v29 = vpop.f32.mrf.mxu2 }
 0x214   : > { %v1882_v45 = vpop.f32.mrf.mxu0  ;;  %v1822_v50 = vadd.f32 %v1796_v34, %v1739_v5  ;;  %v1740_v62 = vadd.f32 %v1716_v29, %v1657_v13 }
 0x216   : > { %v1905_v1 = vadd.f32 %v1879_v63, %v1822_v50 }
 0x21a   : > { %v1642_v12 = vpop.f32.mrf.mxu1 }
 0x21b   : > { %v3283_v22 = vadd.f32 %v1642_v12, %v1577_v42  ;;  %v1821_v42 = vadd.f32 %v1793_v23, %v1738_v61  ;;  %v1799_v35 = vpop.f32.mrf.mxu3  ;;  %v1719_v19 = vpop.f32.mrf.mxu2 }
 0x21c   : > { %v1823_v59 = vadd.f32 %v1799_v35, %v1740_v62  ;;  %v1885_v16 = vpop.f32.mrf.mxu0  ;;  %v1741_v26 = vadd.f32 %v1719_v19, %v1658_v10 }
 0x21d   : > { %v1904_v41 = vadd.f32 %v1876_v52, %v1821_v42 }
 0x21e   : > { %v1906_v24 = vadd.f32 %v1882_v45, %v1823_v59 }
 0x222   : > { %v1645_v44 = vpop.f32.mrf.mxu1 }
 0x223   : > { %v3285_v39 = vadd.f32 %v1645_v44, %v1578_v58  ;;  %v1802_v60 = vpop.f32.mrf.mxu3  ;;  %v1722_v14 = vpop.f32.mrf.mxu2 }
 0x224   : > { %v1824_v21 = vadd.f32 %v1802_v60, %v1741_v26  ;;  %v1888_v40 = vpop.f32.mrf.mxu0  ;;  %v1742_v13 = vadd.f32 %v1722_v14, %v3281_v25 }
 0x226   : > { %v1907_v33 = vadd.f32 %v1885_v16, %v1824_v21 }
 0x22a   : > { %v1648_v51 = vpop.f32.mrf.mxu1 }
 0x22b   : > { %v3287_v15 = vadd.f32 %v1648_v51, %v1579_v8  ;;  %v1805_v11 = vpop.f32.mrf.mxu3  ;;  %v1725_v36 = vpop.f32.mrf.mxu2 }
 0x22c   : > { %v1825_v12 = vadd.f32 %v1805_v11, %v1742_v13  ;;  %v1743_v49 = vadd.f32 %v1725_v36, %v3283_v22  ;;  %v1891_v18 = vpop.f32.mrf.mxu0 }
 0x22e   : > { %v1908_v44 = vadd.f32 %v1888_v40, %v1825_v12 }
 0x232   : > { %v1651_v37 = vpop.f32.mrf.mxu1 }
 0x233   : > { %v3289_v2 = vadd.f32 %v1651_v37, %v1580_v57  ;;  %v1808_v9 = vpop.f32.mrf.mxu3  ;;  %v1728_v51 = vpop.f32.mrf.mxu2 }
 0x234   : > { %v1826_v28 = vadd.f32 %v1808_v9, %v1743_v49  ;;  %v1744_v34 = vadd.f32 %v1728_v51, %v3285_v39  ;;  %v1894_v63 = vpop.f32.mrf.mxu0 }
 0x236   : > { %v1909_v54 = vadd.f32 %v1891_v18, %v1826_v28 }
 0x23a   : > { %v1956_v30 = vpop.f32.mrf.mxu1 }
 0x23b   : > { %v1986_v6 = vadd.f32 %v1956_v30, %v1903_v31  ;;  %v1811_v37 = vpop.f32.mrf.mxu3  ;;  %v1731_v29 = vpop.f32.mrf.mxu2 }
 0x23c   : > { %v1827_v22 = vadd.f32 %v1811_v37, %v1744_v34 }
 0x23d   : > { %v2000_v32 = vadd.f32 %v3294_v0, %v1986_v6 }
 0x23e   : > { %v1910_v42 = vadd.f32 %v1894_v63, %v1827_v22 }
 0x23f   : > { %v2010_v20 = vmax.f32 %v2000_v32, 0.0  ;;  %v1745_v32 = vadd.f32 %v1731_v29, %v3287_v15 }
 0x241   : > { %2020 = vst [vmem:[%s3301_s16] sm:$0xff] %v2010_v20 }
 0x242   : > { %v1959_v38 = vpop.f32.mrf.mxu1 }
 0x243   : > { %v1987_v58 = vadd.f32 %v1959_v38, %v1904_v41  ;;  %v1814_v20 = vpop.f32.mrf.mxu3  ;;  %v1897_v38 = vpop.f32.mrf.mxu0 }
 0x244   : > { %v1828_v5 = vadd.f32 %v1814_v20, %v1745_v32  ;;  %v1734_v45 = vpop.f32.mrf.mxu2 }
 0x245   : > { %v2001_v53 = vadd.f32 %v3294_v0, %v1987_v58  ;;  %v1746_v50 = vadd.f32 %v1734_v45, %v3289_v2 }
 0x246   : > { %v1911_v19 = vadd.f32 %v1897_v38, %v1828_v5 }
 0x247   : > { %v2011_v46 = vmax.f32 %v2001_v53, 0.0 }
 0x249   : > { %2021 = vst [vmem:[%s3301_s16 + $0x8] sm:$0xff] %v2011_v46 }
 0x24a   : > { %v1962_v8 = vpop.f32.mrf.mxu1 }
 0x24b   : > { %v1988_v17 = vadd.f32 %v1962_v8, %v1905_v1  ;;  %v1817_v53 = vpop.f32.mrf.mxu3  ;;  %v1900_v60 = vpop.f32.mrf.mxu0 }
 0x24c   : > { %v1829_v15 = vadd.f32 %v1817_v53, %v1746_v50 }
 0x24d   : > { %v2002_v48 = vadd.f32 %v3294_v0, %v1988_v17 }
 0x24e   : > { %v1912_v17 = vadd.f32 %v1900_v60, %v1829_v15 }
 0x24f   : > { %v2012_v47 = vmax.f32 %v2002_v48, 0.0 }
 0x251   : > { %2022 = vst [vmem:[%s3301_s16 + $0x10] sm:$0xff] %v2012_v47 }
 0x252   : > { %v1965_v57 = vpop.f32.mrf.mxu1 }
 0x253   : > { %v1989_v4 = vadd.f32 %v1965_v57, %v1906_v24 }
 0x255   : > { %v2003_v56 = vadd.f32 %v3294_v0, %v1989_v4 }
 0x257   : > { %v2013_v7 = vmax.f32 %v2003_v56, 0.0 }
 0x259   : > { %2023 = vst [vmem:[%s3301_s16 + $0x18] sm:$0xff] %v2013_v7 }
 0x25a   : > { %v1968_v27 = vpop.f32.mrf.mxu1 }
 0x25b   : > { %v1990_v43 = vadd.f32 %v1968_v27, %v1907_v33 }
 0x25d   : > { %v2004_v10 = vadd.f32 %v3294_v0, %v1990_v43 }
 0x25f   : > { %v2014_v55 = vmax.f32 %v2004_v10, 0.0 }
 0x261   : > { %2024 = vst [vmem:[%s3301_s16 + $0x20] sm:$0xff] %v2014_v55 }
 0x262   : > { %v1971_v23 = vpop.f32.mrf.mxu1 }
 0x263   : > { %v1991_v52 = vadd.f32 %v1971_v23, %v1908_v44 }
 0x265   : > { %v2005_v25 = vadd.f32 %v3294_v0, %v1991_v52 }
 0x267   : > { %v2015_v3 = vmax.f32 %v2005_v25, 0.0 }
 0x269   : > { %2025 = vst [vmem:[%s3301_s16 + $0x28] sm:$0xff] %v2015_v3 }
 0x26a   : > { %v1974_v31 = vpop.f32.mrf.mxu1 }
 0x26b   : > { %v1992_v61 = vadd.f32 %v1974_v31, %v1909_v54 }
 0x26d   : > { %v2006_v30 = vadd.f32 %v3294_v0, %v1992_v61 }
 0x26f   : > { %v2016_v6 = vmax.f32 %v2006_v30, 0.0 }
 0x271   : > { %2026 = vst [vmem:[%s3301_s16 + $0x30] sm:$0xff] %v2016_v6 }
 0x272   : > { %v1977_v35 = vpop.f32.mrf.mxu1 }
 0x273   : > { %v1993_v41 = vadd.f32 %v1977_v35, %v1910_v42 }
 0x275   : > { %v2007_v39 = vadd.f32 %v3294_v0, %v1993_v41 }
 0x277   : > { %v2017_v58 = vmax.f32 %v2007_v39, 0.0 }
 0x279   : > { %2027 = vst [vmem:[%s3301_s16 + $0x38] sm:$0xff] %v2017_v58 }
 0x27a   : > { %v1980_v46 = vpop.f32.mrf.mxu1 }
 0x27b   : > { %v1994_v1 = vadd.f32 %v1980_v46, %v1911_v19 }
 0x27d   : > { %v2008_v62 = vadd.f32 %v3294_v0, %v1994_v1 }
 0x27f   : > { %v2018_v8 = vmax.f32 %v2008_v62, 0.0 }
 0x281   : > { %2028 = vst [vmem:[%s3301_s16 + $0x40] sm:$0xff] %v2018_v8 }
 0x282   : > { %v1983_v59 = vpop.f32.mrf.mxu1 }
 0x283   : > { %v1995_v16 = vadd.f32 %v1983_v59, %v1912_v17 }
 0x285   : > { %v2009_v48 = vadd.f32 %v3294_v0, %v1995_v16 }
 0x287   : > { %v2019_v14 = vmax.f32 %v2009_v48, 0.0 }
 0x289   : > { %2029 = vst [vmem:[%s3301_s16 + $0x48] sm:$0xff] %v2019_v14 }
 0x28a PF: > { %s16_s21 = sadd.s32 1, %s2217_s21  }
 0x28b   : > { %p13_p4 = scmp.ge.s32.totalorder %s16_s21, 4  }
 0x28d   :  { %15 = sbr.rel (!%p13_p4) target bundleno = 1 (0x1), region = 74 }

</bundles_post_ra>
